<compile_context>
chip_gen: v5e
topology: v5e:2x2
jax: 0.10.0
libtpu: 0.0.40
codegen_flags: <defaults>
</compile_context>

<pallas_src>
import jax
import jax.numpy as jnp
from jax.experimental import pallas as pl
from jax.experimental.pallas import tpu as pltpu


def affinity_kernel(x_ref, y_ref, wsr_ref, wtg_ref, w1a_ref, w1b_ref,
                    b1_ref, w2_ref, b2_ref, out_ref):
    # Block shapes:
    #   x_ref / y_ref : (1, N, C) f32        wsr/wtg : (C, C)  mm-dtype, (in, out)
    #   w1a / w1b     : (C, 2C)  mm-dtype    b1      : (1, 2C) f32
    #   w2            : (1, 2C)  f32         b2      : (1, 1)  f32
    #   out_ref       : (1, N, N) f32
    mm_dtype = wsr_ref.dtype

    x = x_ref[0].astype(mm_dtype)                                        # (N, C)
    y = y_ref[0].astype(mm_dtype)                                        # (N, C)

    # project_sr / project_tg (bias-free Linear(256,256)) — MXU, f32 accumulation.
    xp = jnp.dot(x, wsr_ref[...], preferred_element_type=jnp.float32)    # (N, C)
    yp = jnp.dot(y, wtg_ref[...], preferred_element_type=jnp.float32)    # (N, C)

    # Decomposed fc_M[0]: concat([xp_i, yp_j]) @ W1 == xp_i @ W1a + yp_j @ W1b.
    # Each half is computed once per batch (not once per target column).
    hx = jnp.dot(xp.astype(mm_dtype), w1a_ref[...],
                 preferred_element_type=jnp.float32)                      # (N, 2C)
    hy = jnp.dot(yp.astype(mm_dtype), w1b_ref[...],
                 preferred_element_type=jnp.float32) + b1_ref[...]        # (N, 2C)

    # Pairwise hidden activations: h[i, j, :] = relu(hx[i] + hy[j])  -> (N, N, 2C), VPU only.
    h = jnp.maximum(hx[:, None, :] + hy[None, :, :], 0.0)

    # fc_M[2] (Linear(512, 1)) as multiply + lane reduce; one dense (N, N) store.
    m = jnp.sum(h * w2_ref[...], axis=-1) + b2_ref[...]                   # (N, N)
    out_ref[0] = m.astype(out_ref.dtype)


def affinity_forward(X, Y, params, matmul_dtype=jnp.bfloat16):
    B, N, C = X.shape
    wsr_t, wtg_t, w1_t, b1, w2_row, b2 = params
    # Cast only the MXU operands; split fc_M[0]'s (2C, 2C) (in, out) weight into its
    # X-input and Y-input halves so the kernel never materializes the concat.
    wsr_mm = wsr_t.astype(matmul_dtype)
    wtg_mm = wtg_t.astype(matmul_dtype)
    w1a = w1_t[:C, :].astype(matmul_dtype)
    w1b = w1_t[C:, :].astype(matmul_dtype)

    return pl.pallas_call(
        affinity_kernel,
        out_shape=jax.ShapeDtypeStruct((B, N, N), jnp.float32),
        grid=(B,),
        in_specs=[
            pl.BlockSpec((1, N, C), lambda b: (b, 0, 0)),        # X
            pl.BlockSpec((1, N, C), lambda b: (b, 0, 0)),        # Y
            pl.BlockSpec((C, C), lambda b: (0, 0)),              # project_sr weight (in, out)
            pl.BlockSpec((C, C), lambda b: (0, 0)),              # project_tg weight (in, out)
            pl.BlockSpec((C, 2 * C), lambda b: (0, 0)),          # fc_M[0] weight, X half
            pl.BlockSpec((C, 2 * C), lambda b: (0, 0)),          # fc_M[0] weight, Y half
            pl.BlockSpec((1, 2 * C), lambda b: (0, 0)),          # fc_M[0] bias
            pl.BlockSpec((1, 2 * C), lambda b: (0, 0)),          # fc_M[2] weight (row vector)
            pl.BlockSpec((1, 1), lambda b: (0, 0)),              # fc_M[2] bias
        ],
        out_specs=pl.BlockSpec((1, N, N), lambda b: (b, 0, 0)),
        compiler_params=pltpu.CompilerParams(dimension_semantics=("parallel",)),
    )(X, Y, wsr_mm, wtg_mm, w1a, w1b, b1, w2_row, b2)


def init_params(key, d=256):
    # Mirrors Affinity.reset_parameters(): normal(std=0.01) weights, zero biases.
    k1, k2, k3, k4 = jax.random.split(key, 4)
    std = 0.01
    W_sr = std * jax.random.normal(k1, (d, d), jnp.float32)          # torch (out, in)
    W_tg = std * jax.random.normal(k2, (d, d), jnp.float32)
    W1 = std * jax.random.normal(k3, (2 * d, 2 * d), jnp.float32)    # Linear(512, 512)
    b1 = jnp.zeros((1, 2 * d), jnp.float32)
    W2 = std * jax.random.normal(k4, (1, 2 * d), jnp.float32)        # Linear(512, 1)
    b2 = jnp.zeros((1, 1), jnp.float32)
    # pre-transpose square weights to (in, out) so the kernel does x @ W
    return (W_sr.T, W_tg.T, W1.T, b1, W2, b2)


def affinity_ref(X, Y, params, matmul_dtype=jnp.float32):
    # Pure-JAX reference reproducing the PyTorch forward (concat then fc_M).
    wsr_t, wtg_t, w1_t, b1, w2_row, b2 = params
    Xp = jnp.dot(X.astype(matmul_dtype), wsr_t.astype(matmul_dtype),
                 preferred_element_type=jnp.float32)
    Yp = jnp.dot(Y.astype(matmul_dtype), wtg_t.astype(matmul_dtype),
                 preferred_element_type=jnp.float32)
    B, N, C = Xp.shape
    Xk = jnp.broadcast_to(Xp[:, :, None, :], (B, N, N, C))
    Yk = jnp.broadcast_to(Yp[:, None, :, :], (B, N, N, C))
    M = jnp.concatenate([Xk, Yk], axis=-1)                           # (B, N, N, 2C)
    H = jnp.dot(M.astype(matmul_dtype), w1_t.astype(matmul_dtype),
                preferred_element_type=jnp.float32) + b1[0]
    H = jnp.maximum(H, 0.0)
    out = jnp.dot(H, w2_row.T) + b2
    return out.squeeze(-1)


if __name__ == "__main__":
    key = jax.random.PRNGKey(0)
    kx, ky, kp = jax.random.split(key, 3)

    B, N, C = 2, 8, 256  # feature dim fixed at 256 by the module definition
    X = jax.random.normal(kx, (B, N, C), jnp.float32)
    Y = jax.random.normal(ky, (B, N, C), jnp.float32)
    params = init_params(kp, d=C)

    # 1) Exact-semantics check: f32 MXU operands vs the PyTorch-order reference.
    out_f32 = jax.block_until_ready(affinity_forward(X, Y, params, matmul_dtype=jnp.float32))
    ref_f32 = affinity_ref(X, Y, params, matmul_dtype=jnp.float32)
    assert out_f32.shape == (B, N, N)
    assert jnp.allclose(out_f32, ref_f32, atol=1e-5, rtol=1e-4), \
        float(jnp.max(jnp.abs(out_f32 - ref_f32)))

    # 2) Fast path (default): bf16 MXU operands, f32 accumulation / elementwise,
    #    checked against a bf16-matched reference (differences are only f32 accumulation order).
    out_bf16 = jax.block_until_ready(affinity_forward(X, Y, params))
    ref_bf16 = affinity_ref(X, Y, params, matmul_dtype=jnp.bfloat16)
    assert jnp.allclose(out_bf16, ref_bf16, atol=1e-4, rtol=1e-2), \
        float(jnp.max(jnp.abs(out_bf16 - ref_bf16)))

    print("KERNEL_OK")
</pallas_src>

<mosaic_0001>
module attributes {stable_mosaic.version = 11 : i64} {
  func.func @affinity_kernel(%arg0: i32, %arg1: memref<1x8x256xf32, #tpu.memory_space<vmem>>, %arg2: memref<1x8x256xf32, #tpu.memory_space<vmem>>, %arg3: memref<256x256xf32, #tpu.memory_space<vmem>>, %arg4: memref<256x256xf32, #tpu.memory_space<vmem>>, %arg5: memref<256x512xf32, #tpu.memory_space<vmem>>, %arg6: memref<256x512xf32, #tpu.memory_space<vmem>>, %arg7: memref<1x512xf32, #tpu.memory_space<vmem>>, %arg8: memref<1x512xf32, #tpu.memory_space<vmem>>, %arg9: memref<1x1xf32, #tpu.memory_space<vmem>>, %arg10: memref<1x8x8xf32, #tpu.memory_space<vmem>>) attributes {dimension_semantics = [#tpu.dimension_semantics<parallel>], iteration_bounds = array<i64: 2>, scalar_prefetch = 0 : i64, scratch_operands = 0 : i64, tpu.core_type = #tpu.core_type<tc>, window_params = [{transform_indices = @transform_0, window_bounds = array<i64: 1, 8, 256>}, {transform_indices = @transform_1, window_bounds = array<i64: 1, 8, 256>}, {pipeline_mode = #tpu.pipeline_mode<synchronous>, transform_indices = @transform_2, window_bounds = array<i64: 256, 256>}, {pipeline_mode = #tpu.pipeline_mode<synchronous>, transform_indices = @transform_3, window_bounds = array<i64: 256, 256>}, {pipeline_mode = #tpu.pipeline_mode<synchronous>, transform_indices = @transform_4, window_bounds = array<i64: 256, 512>}, {pipeline_mode = #tpu.pipeline_mode<synchronous>, transform_indices = @transform_5, window_bounds = array<i64: 256, 512>}, {pipeline_mode = #tpu.pipeline_mode<synchronous>, transform_indices = @transform_6, window_bounds = array<i64: 1, 512>}, {pipeline_mode = #tpu.pipeline_mode<synchronous>, transform_indices = @transform_7, window_bounds = array<i64: 1, 512>}, {pipeline_mode = #tpu.pipeline_mode<synchronous>, transform_indices = @transform_8, window_bounds = array<i64: 1, 1>}, {transform_indices = @transform_9, window_bounds = array<i64: 1, 8, 8>}]} {
    %c0 = arith.constant 0 : index
    %c0_0 = arith.constant 0 : index
    %c0_1 = arith.constant 0 : index
    %0 = vector.load %arg1[%c0, %c0_0, %c0_1] : memref<1x8x256xf32, #tpu.memory_space<vmem>>, vector<1x8x256xf32>
    %1 = vector.shape_cast %0 : vector<1x8x256xf32> to vector<8x256xf32>
    %c0_2 = arith.constant 0 : index
    %c0_3 = arith.constant 0 : index
    %c0_4 = arith.constant 0 : index
    %2 = vector.load %arg2[%c0_2, %c0_3, %c0_4] : memref<1x8x256xf32, #tpu.memory_space<vmem>>, vector<1x8x256xf32>
    %3 = vector.shape_cast %2 : vector<1x8x256xf32> to vector<8x256xf32>
    %c0_5 = arith.constant 0 : index
    %c0_6 = arith.constant 0 : index
    %4 = vector.load %arg3[%c0_5, %c0_6] : memref<256x256xf32, #tpu.memory_space<vmem>>, vector<256x256xf32>
    %cst = arith.constant dense<0.000000e+00> : vector<8x256xf32>
    %5 = tpu.matmul %1, %4, %cst {dimension_numbers = #tpu.dot_dimension_numbers<[1], [0], [0], [1], [0, 0, 1, 1], [], []>} : vector<8x256xf32>, vector<256x256xf32>, vector<8x256xf32> -> vector<8x256xf32>
    %c0_7 = arith.constant 0 : index
    %c0_8 = arith.constant 0 : index
    %6 = vector.load %arg4[%c0_7, %c0_8] : memref<256x256xf32, #tpu.memory_space<vmem>>, vector<256x256xf32>
    %cst_9 = arith.constant dense<0.000000e+00> : vector<8x256xf32>
    %7 = tpu.matmul %3, %6, %cst_9 {dimension_numbers = #tpu.dot_dimension_numbers<[1], [0], [0], [1], [0, 0, 1, 1], [], []>} : vector<8x256xf32>, vector<256x256xf32>, vector<8x256xf32> -> vector<8x256xf32>
    %c0_10 = arith.constant 0 : index
    %c0_11 = arith.constant 0 : index
    %8 = vector.load %arg5[%c0_10, %c0_11] : memref<256x512xf32, #tpu.memory_space<vmem>>, vector<256x512xf32>
    %cst_12 = arith.constant dense<0.000000e+00> : vector<8x512xf32>
    %9 = tpu.matmul %5, %8, %cst_12 {dimension_numbers = #tpu.dot_dimension_numbers<[1], [0], [0], [1], [0, 0, 1, 1], [], []>} : vector<8x256xf32>, vector<256x512xf32>, vector<8x512xf32> -> vector<8x512xf32>
    %c0_13 = arith.constant 0 : index
    %c0_14 = arith.constant 0 : index
    %10 = vector.load %arg6[%c0_13, %c0_14] : memref<256x512xf32, #tpu.memory_space<vmem>>, vector<256x512xf32>
    %cst_15 = arith.constant dense<0.000000e+00> : vector<8x512xf32>
    %11 = tpu.matmul %7, %10, %cst_15 {dimension_numbers = #tpu.dot_dimension_numbers<[1], [0], [0], [1], [0, 0, 1, 1], [], []>} : vector<8x256xf32>, vector<256x512xf32>, vector<8x512xf32> -> vector<8x512xf32>
    %c0_16 = arith.constant 0 : index
    %c0_17 = arith.constant 0 : index
    %12 = vector.load %arg7[%c0_16, %c0_17] : memref<1x512xf32, #tpu.memory_space<vmem>>, vector<1x512xf32>
    %13 = vector.broadcast %12 : vector<1x512xf32> to vector<8x512xf32>
    %14 = arith.addf %11, %13 : vector<8x512xf32>
    %15 = vector.shape_cast %9 : vector<8x512xf32> to vector<8x1x512xf32>
    %16 = vector.shape_cast %14 : vector<8x512xf32> to vector<1x8x512xf32>
    %17 = vector.broadcast %15 : vector<8x1x512xf32> to vector<8x8x512xf32>
    %18 = vector.broadcast %16 : vector<1x8x512xf32> to vector<8x8x512xf32>
    %19 = arith.addf %17, %18 : vector<8x8x512xf32>
    %cst_18 = arith.constant 0.000000e+00 : f32
    %20 = vector.broadcast %cst_18 : f32 to vector<8x8x512xf32>
    %21 = arith.maximumf %19, %20 : vector<8x8x512xf32>
    %c0_19 = arith.constant 0 : index
    %c0_20 = arith.constant 0 : index
    %22 = vector.load %arg8[%c0_19, %c0_20] : memref<1x512xf32, #tpu.memory_space<vmem>>, vector<1x512xf32>
    %23 = vector.shape_cast %22 : vector<1x512xf32> to vector<1x1x512xf32>
    %24 = vector.broadcast %23 : vector<1x1x512xf32> to vector<8x8x512xf32>
    %25 = arith.mulf %21, %24 : vector<8x8x512xf32>
    %cst_21 = arith.constant dense<0.000000e+00> : vector<8x8xf32>
    %26 = vector.multi_reduction <add>, %25, %cst_21 [2] : vector<8x8x512xf32> to vector<8x8xf32>
    %c0_22 = arith.constant 0 : index
    %c0_23 = arith.constant 0 : index
    %27 = vector.load %arg9[%c0_22, %c0_23] : memref<1x1xf32, #tpu.memory_space<vmem>>, vector<1x1xf32>
    %28 = vector.broadcast %27 : vector<1x1xf32> to vector<8x8xf32>
    %29 = arith.addf %26, %28 : vector<8x8xf32>
    %c0_24 = arith.constant 0 : index
    %c0_25 = arith.constant 0 : index
    %c0_26 = arith.constant 0 : index
    %30 = vector.load %arg10[%c0_24, %c0_25, %c0_26] : memref<1x8x8xf32, #tpu.memory_space<vmem>>, vector<1x8x8xf32>
    %31 = vector.shape_cast %30 : vector<1x8x8xf32> to vector<8x8xf32>
    %32 = vector.shape_cast %29 : vector<8x8xf32> to vector<1x8x8xf32>
    tpu.vector_store %arg10[%c0_24, %c0_25, %c0_26], %32 {strides = array<i32>} : memref<1x8x8xf32, #tpu.memory_space<vmem>>, vector<1x8x8xf32>,
    return
  }
  func.func @transform_0(%arg0: i32) -> (i32, i32, i32) {
    %c0_i32 = arith.constant 0 : i32
    %c0_i32_0 = arith.constant 0 : i32
    %c0_i32_1 = arith.constant 0 : i32
    return %arg0, %c0_i32, %c0_i32_0 : i32, i32, i32
  }
  func.func @transform_1(%arg0: i32) -> (i32, i32, i32) {
    %c0_i32 = arith.constant 0 : i32
    %c0_i32_0 = arith.constant 0 : i32
    %c0_i32_1 = arith.constant 0 : i32
    return %arg0, %c0_i32, %c0_i32_0 : i32, i32, i32
  }
  func.func @transform_2(%arg0: i32) -> (i32, i32) {
    %c0_i32 = arith.constant 0 : i32
    %c0_i32_0 = arith.constant 0 : i32
    %c0_i32_1 = arith.constant 0 : i32
    return %c0_i32, %c0_i32_0 : i32, i32
  }
  func.func @transform_3(%arg0: i32) -> (i32, i32) {
    %c0_i32 = arith.constant 0 : i32
    %c0_i32_0 = arith.constant 0 : i32
    %c0_i32_1 = arith.constant 0 : i32
    return %c0_i32, %c0_i32_0 : i32, i32
  }
  func.func @transform_4(%arg0: i32) -> (i32, i32) {
    %c0_i32 = arith.constant 0 : i32
    %c0_i32_0 = arith.constant 0 : i32
    %c0_i32_1 = arith.constant 0 : i32
    return %c0_i32, %c0_i32_0 : i32, i32
  }
  func.func @transform_5(%arg0: i32) -> (i32, i32) {
    %c0_i32 = arith.constant 0 : i32
    %c0_i32_0 = arith.constant 0 : i32
    %c0_i32_1 = arith.constant 0 : i32
    return %c0_i32, %c0_i32_0 : i32, i32
  }
  func.func @transform_6(%arg0: i32) -> (i32, i32) {
    %c0_i32 = arith.constant 0 : i32
    %c0_i32_0 = arith.constant 0 : i32
    %c0_i32_1 = arith.constant 0 : i32
    return %c0_i32, %c0_i32_0 : i32, i32
  }
  func.func @transform_7(%arg0: i32) -> (i32, i32) {
    %c0_i32 = arith.constant 0 : i32
    %c0_i32_0 = arith.constant 0 : i32
    %c0_i32_1 = arith.constant 0 : i32
    return %c0_i32, %c0_i32_0 : i32, i32
  }
  func.func @transform_8(%arg0: i32) -> (i32, i32) {
    %c0_i32 = arith.constant 0 : i32
    %c0_i32_0 = arith.constant 0 : i32
    %c0_i32_1 = arith.constant 0 : i32
    return %c0_i32, %c0_i32_0 : i32, i32
  }
  func.func @transform_9(%arg0: i32) -> (i32, i32, i32) {
    %c0_i32 = arith.constant 0 : i32
    %c0_i32_0 = arith.constant 0 : i32
    %c0_i32_1 = arith.constant 0 : i32
    return %arg0, %c0_i32, %c0_i32_0 : i32, i32, i32
  }
}

</mosaic_0001>

<bundles_post_ra>
// kernel: tpu_custom_call.1
= control target key start
LH: loop header
LB: loop body
LE: loop exit
PB: predicated region body
PF: predicated region fallthrough
CT: control target
= control target key end

     0   :  { %s2694_s0 = inlined_call_operand.hbm [shape: f32[2,8,256], index: 0, kind: input, shape index: {}]   ;;  %s2695_s1 = inlined_call_operand.hbm [shape: f32[2,8,256], index: 1, kind: input, shape index: {}]   ;;  %s2696_s2 = inlined_call_operand.hbm [shape: f32[256,256], index: 2, kind: input, shape index: {}]   ;;  %s2697_s3 = inlined_call_operand.hbm [shape: f32[256,256], index: 3, kind: input, shape index: {}]   ;;  %s2698_s4 = inlined_call_operand.hbm [shape: f32[256,512], index: 4, kind: input, shape index: {}]   ;;  %s2699_s5 = inlined_call_operand.hbm [shape: f32[256,512], index: 5, kind: input, shape index: {}]   ;;  %s2700_s6 = inlined_call_operand.vmem [shape: f32[1,512], index: 6, kind: input, shape index: {}]   ;;  %s2701_s7 = inlined_call_operand.vmem [shape: f32[1,512], index: 7, kind: input, shape index: {}]   ;;  %s2702_s8 = inlined_call_operand.<no memory space> [shape: f32[1,1], index: 8, kind: input, shape index: {}]   ;;  %s2703_s9 = inlined_call_operand.hbm [shape: f32[2,8,8], index: 9, kind: output, shape index: {}]  }
   0x1   :  { %2707 = sst [smem:[#allocation24_spill]] %s2696_s2  ;;  %v14_v0 = vstv %s2702_s8 }
   0x2   :  { %2708 = sst [smem:[#allocation25_spill]] %s2697_s3  ;;  %15 = vst [vmem:[#allocation2] sm:$0x1] %v14_v0 }
   0x3   :  { %2709 = sst [smem:[#allocation26_spill]] %s2698_s4 }
   0x4   :  { %2710 = sst [smem:[#allocation27_spill]] %s2699_s5 }
   0x5   :  { %16 = vsyncpa [#allocation4], 0 }
   0x6   :  { %18 = vsyncpa [#allocation4 + $0x1], 0 }
   0x7   :  { %19 = vsyncpa [#allocation7], 0 }
   0x8   :  { %21 = vsyncpa [#allocation7 + $0x1], 0 }
   0x9   :  { %22 = vsyncpa [#allocation10], 0 }
   0xa   :  { %23 = vsyncpa [#allocation13], 0 }
   0xb   :  { %24 = vsyncpa [#allocation5], 0 }
   0xc   :  { %26 = vsyncpa [#allocation5 + $0x1], 0  ;;  %s2245_s11 = smov 0   ;;  %s2247_s12 = smov 0  }
   0xd   :  { %s2249_s13 = smov 0   ;;  %s2251_s14 = smov 0  }
   0xe LB: > { %2711 = sst [smem:[#allocation21_spill]] %s2177_s13  ;;  %s2269_s17 = sadd.s32 4294967295, %s2181_s14   ;;  %s2181_s14 = sphi %s2251_s14, %s2726_s14   ;;  %s2177_s13 = sphi %s2249_s13, %s2728_s13   ;;  %s2173_s12 = sphi %s2247_s12, %s2730_s12   ;;  %s2169_s11 = sphi %s2245_s11, %s2729_s11  }
   0xf   : > { %s2712_s2 = sld [smem:[#allocation24_spill]]  ;;  %p1793_p0 = scmp.ge.s32.totalorder %s2181_s14, 1 }
  0x10   : > { %p53_p1 = scmp.eq.s32.totalorder %s2269_s17, 0  ;;  %p262_p2 = scmp.lt.s32.totalorder %s2181_s14, 3 }
  0x11   : > { %s2183_s19 = smov [#allocation8]   ;;  %s2714_s3 = sld [smem:[#allocation25_spill]] }
  0x12   : > { %p2274_p3 = pnand %p1793_p0, %p262_p2  ;;  %s275_s20 = sshll.u32 %s2183_s19, 4  ;;  %s276_s20 = int_to_ptr.vmem [resolvable:$true] %s275_s20 }
  0x13   : > { %s2716_s4 = sld [smem:[#allocation26_spill]]  ;;  %s2184_s28 = smov [#allocation9]  }
  0x14   : > { %p1841_p4 = pneg %p2274_p3  ;;  %s289_s29 = sshll.u32 %s2184_s28, 4  ;;  %s290_s29 = int_to_ptr.vmem [resolvable:$true] %s289_s29 }
  0x15   : > { %s273_s16 = sshll.u32 %s2712_s2, 4  ;;  %s2185_s30 = smov 256   ;;  %s274_s16 = int_to_ptr.hbm [resolvable:$true] %s273_s16 }
  0x16   : > { %p2286_p6 = pnand %p1841_p4, %p53_p1  ;;  %s2186_s10 = smov 16  }
  0x17   : > { %s287_s23 = sshll.u32 %s2714_s3, 4  ;;  %s2187_s8 = smov [#allocation11]   ;;  %s288_s23 = int_to_ptr.hbm [resolvable:$true] %s287_s23 }
  0x18   : > { %1844 = dma.hbm_to_vmem [thread:$0]  (!%p2286_p6), %s274_s16, 8192, %s276_s20, [#allocation7], %s2185_s30, %s2185_s30, %s2186_s10  }
  0x19   : > { %s301_s27 = sshll.u32 %s2716_s4, 4  ;;  %s303_s15 = sshll.u32 %s2187_s8, 4  ;;  %s302_s27 = int_to_ptr.hbm [resolvable:$true] %s301_s27  ;;  %s304_s15 = int_to_ptr.vmem [resolvable:$true] %s303_s15 }
  0x1a   : > { %1847 = dma.hbm_to_vmem [thread:$0]  (!%p2286_p6), %s288_s23, 8192, %s290_s29, [#allocation10], %s2185_s30, %s2185_s30, %s2186_s10  }
  0x1b   : > { %s2717_s5 = sld [smem:[#allocation27_spill]]  ;;  %s2188_s16 = smov 512  }
  0x1c   : > { %s2189_s20 = smov 32   ;;  %s2190_s23 = smov [#allocation12]  }
  0x1d   : > { %1850 = dma.hbm_to_vmem [thread:$0]  (!%p2286_p6), %s302_s27, 16384, %s304_s15, [#allocation10], %s2188_s16, %s2188_s16, %s2189_s20  }
  0x1e   : > { %s317_s25 = sshll.u32 %s2190_s23, 4  ;;  %s1792_s26 = sadd.s32 4294967294, %s2181_s14   ;;  %s318_s25 = int_to_ptr.vmem [resolvable:$true] %s317_s25 }
  0x1f   : > { %s2306_s28 = sadd.s32 1, %s2181_s14   ;;  %s39_s30 = sadd.s32 1, %s2177_s13 }
  0x20   : > { %2718 = sst [smem:[#allocation22_spill]] %s2306_s28  ;;  %s36_s29 = ssub.s32 %s2181_s14, %s2306_s28 }
  0x21   : > { %s315_s22 = sshll.u32 %s2717_s5, 4  ;;  %p37_p7 = scmp.eq.s32.totalorder %s36_s29, 0  ;;  %s316_s22 = int_to_ptr.hbm [resolvable:$true] %s315_s22 }
  0x22   : > { %1853 = dma.hbm_to_vmem [thread:$0]  (!%p2286_p6), %s316_s22, 16384, %s318_s25, [#allocation13], %s2188_s16, %s2188_s16, %s2189_s20  }
  0x23   : > { %p46_p8 = scmp.ne.s32.totalorder %s2177_s13, %s2173_s12  ;;  %p47_p9 = scmp.eq.s32.totalorder %s2181_s14, 0 }
  0x24   : > { %p52_p10 = scmp.ne.s32.totalorder %s2173_s12, %s2169_s11  ;;  %p249_p13 = scmp.eq.s32.totalorder %s2269_s17, 1 }
  0x25   : > { %s2317_s27 = scalar_select %p37_p7, %s2177_s13, %s39_s30  }
  0x26   : > { %p2319_p11 = por %p47_p9, %p46_p8  ;;  %p2325_p12 = por %p53_p1, %p52_p10 }
  0x27   : > { %2719 = sst [smem:[#allocation23_spill]] %s2317_s27  ;;  %p255_p0 = scmp.eq.s32.totalorder %s1792_s26, 1 }
  0x28   : > { %p1869_p2 = scmp.lt.s32.totalorder %s2181_s14, 2  ;;  %s340_s8 = sand.u32 1, %s2177_s13  }
  0x29   : > { %p2332_p4 = por %p249_p13, %p46_p8  ;;  %p2336_p6 = por %p255_p0, %p52_p10 }
  0x2a   : > { %s2340_s21 = sshll.u32 %s340_s8, 4  ;;  %s1817_s22 = sshll.u32 %s2181_s14, 4 }
  0x2b   : > { %s349_s23 = scalar_lea.hbm %s2694_s0, %s1817_s22  ;;  %s344_s25 = scalar_lea.vmem [#allocation3], %s2340_s21 }
  0x2c   : > { %s353_s26 = sshll.u32 %s344_s25, 4  ;;  %s351_s29 = sshll.u32 %s349_s23, 4  ;;  %s354_s26 = int_to_ptr.vmem [resolvable:$true] %s353_s26  ;;  %s352_s29 = int_to_ptr.hbm [resolvable:$true] %s351_s29 }
  0x2d   : > { %p2349_p7 = pnand %p1869_p2, %p2319_p11  ;;  %s369_s4 = scalar_lea.hbm %s2695_s1, %s1817_s22 }
  0x2e   : > { %s360_s5 = sand.u32 1, %s2181_s14   ;;  %s341_s27 = scalar_lea.sflag [#allocation4], %s340_s8 }
  0x2f   : > { %s2039_s16 = sshra.s32 %s352_s29, 4  ;;  %p2043_p9 = pneg %p2349_p7  ;;  %s2040_s16 = int_to_ptr.hbm [resolvable:$true] %s2039_s16 }
  0x30   : > { %s2041_s20 = scalar_lea.hbm %s2040_s16, 16  ;;  %s2046_s25 = scalar_lea.hbm %s2694_s0, 32 }
  0x31   : > { %p2042_p8 = scmp.ne.s32.totalorder %s2040_s16, %s2041_s20  ;;  %p2047_p13 = scmp.lt.s32.totalorder %s2040_s16, %s2694_s0 }
  0x32   : > { %p2048_p0 = scmp.lt.s32.totalorder %s2046_s25, %s2041_s20 }
  0x33   : > { %p2044_p10 = pnand %p2043_p9, %p2042_p8 }
  0x34   : > { %p2049_p2 = por %p2048_p0, %p2047_p13 }
  0x35   : > { %p2045_p11 = pneg %p2044_p10 }
  0x37   : > { %p2050_p5 = pnand %p2049_p2, %p2045_p11 }
  0x39   : > { %2053 = shalt.err (!%p2050_p5)
}
  0x3a   : > { %1857 = dma.hbm_to_vmem [thread:$0]  (!%p2349_p7), %s352_s29, 256, %s354_s26, %s341_s27  }
  0x3b   : > { %s371_s8 = sshll.u32 %s369_s4, 4  ;;  %s364_s22 = scalar_lea.vmem [#allocation6], %s2340_s21  ;;  %s372_s8 = int_to_ptr.hbm [resolvable:$true] %s371_s8 }
  0x3c   : > { %s373_s13 = sshll.u32 %s364_s22, 4  ;;  %s361_s10 = scalar_lea.sflag [#allocation7], %s360_s5  ;;  %s374_s13 = int_to_ptr.vmem [resolvable:$true] %s373_s13 }
  0x3d   : > { %s2069_s23 = sshra.s32 %s372_s8, 4  ;;  %s2076_s25 = scalar_lea.hbm %s2695_s1, 32  ;;  %s2070_s23 = int_to_ptr.hbm [resolvable:$true] %s2069_s23 }
  0x3e   : > { %s2071_s28 = scalar_lea.hbm %s2070_s23, 16  ;;  %p2077_p5 = scmp.lt.s32.totalorder %s2070_s23, %s2695_s1 }
  0x3f   : > { %p2072_p8 = scmp.ne.s32.totalorder %s2070_s23, %s2071_s28  ;;  %p2078_p13 = scmp.lt.s32.totalorder %s2076_s25, %s2071_s28 }
  0x41   : > { %p2074_p10 = pnand %p2072_p8, %p2043_p9  ;;  %p2079_p0 = por %p2078_p13, %p2077_p5 }
  0x43   : > { %p2075_p11 = pneg %p2074_p10 }
  0x45   : > { %p2080_p2 = pnand %p2079_p0, %p2075_p11 }
  0x47   : > { %2083 = shalt.err (!%p2080_p2)
}
  0x48   : > { %1860 = dma.hbm_to_vmem [thread:$0]  (!%p2349_p7), %s372_s8, 256, %s374_s13, %s361_s10  }
  0x49   : > { %382 = sbr.rel (%p2274_p3) target bundleno = 621 (0x26d), region = 56  ;;  %s2385_s4 = sand.u32 (!%p2274_p3), 1, %s2173_s12  }
  0x4a   : > { %s1806_s5 = sshll.u32 (!%p2274_p3), %s2385_s4, 4  ;;  %s385_s21 = scalar_lea.sflag (!%p2274_p3), [#allocation4], %s2385_s4 }
  0x4b   : > { %s2389_s26 = scalar_lea.vmem (!%p2274_p3), [#allocation3], %s1806_s5 }
  0x4e   : > { %2144 = dma.done.wait (%p2325_p12), %s385_s21, 256  }
  0x4f   : > { %2146 = vsyncadd (%p2325_p12), %s385_s21, 4294967040  ;;  %s394_s13 = sand.u32 1, %s2269_s17   ;;  %s2396_s28 = scalar_lea.vmem [#allocation6], %s1806_s5 }
  0x50   : > { %s395_s18 = scalar_lea.sflag [#allocation7], %s394_s13 }
  0x51   : > { %2148 = dma.done.wait (%p2325_p12), %s395_s18, 256  }
  0x52   : > { %2150 = vsyncadd (%p2325_p12), %s395_s18, 4294967040 }
  0x53   : > { %2152 = dma.done.wait (%p53_p1), [#allocation7], 8192  }
  0x54   : > { %2154 = vsyncadd (%p53_p1), [#allocation7], 4294959104 }
  0x55   : > { %2156 = dma.done.wait (%p53_p1), [#allocation10], 24576  }
  0x56   : > { %2158 = vsyncadd (%p53_p1), [#allocation10], 4294942720 }
  0x57   : > { %2160 = dma.done.wait (%p53_p1), [#allocation13], 16384  }
  0x58   : > { %2162 = vsyncadd (%p53_p1), [#allocation13], 4294950912  ;;  %v493_v1 = vld [vmem:[#allocation8 + $0xf0] sm:$0xff]  ;;  %v494_v3 = vld [vmem:[#allocation8 + $0xf8] sm:$0xff]  ;;  %vm1352_vm0 = vcmask 1043459   ;;  %vm1364_vm1 = vcmask 1045509  }
  0x59   : > { %v525_v2 = vld [vmem:[#allocation8 + $0x1f0] sm:$0xff]  ;;  %527 = vmatpush.msra.mxu0 %v493_v1  ;;  %v526_v4 = vld [vmem:[#allocation8 + $0x1f8] sm:$0xff]  ;;  %v491_v5 = vld [vmem:[#allocation8 + $0xe0] sm:$0xff]  ;;  %567 = vmatpush.msra.mxu2 %v494_v3  ;;  %vm1346_vm2 = vcmask 1042434   ;;  %vm1358_vm3 = vcmask 1044484   ;;  %vm1344_vm4 = vcmask 1040384  }
  0x5a   : > { %547 = vmatpush.msra.mxu1 %v525_v2  ;;  %v523_v6 = vld [vmem:[#allocation8 + $0x1e0] sm:$0xff]  ;;  %587 = vmatpush.msra.mxu3 %v526_v4  ;;  %v492_v7 = vld [vmem:[#allocation8 + $0xe8] sm:$0xff]  ;;  %v489_v9 = vld [vmem:[#allocation8 + $0xd0] sm:$0xff]  ;;  %vm1370_vm5 = vcmask 1046534   ;;  %vm1350_vm6 = vcmask 1041409   ;;  %vm1376_vm7 = vcmask 1046528  }
  0x5b   : > { %v524_v8 = vld [vmem:[#allocation8 + $0x1e8] sm:$0xff]  ;;  %528 = vmatpush.msra.mxu0 %v491_v5  ;;  %v521_v10 = vld [vmem:[#allocation8 + $0x1d0] sm:$0xff]  ;;  %v490_v11 = vld [vmem:[#allocation8 + $0xd8] sm:$0xff]  ;;  %568 = vmatpush.msra.mxu2 %v492_v7  ;;  %vm1366_vm8 = vcmask 1044483   ;;  %vm1360_vm9 = vcmask 1043458   ;;  %vm1348_vm10 = vcmask 1041408  }
  0x5c   : > { %548 = vmatpush.msra.mxu1 %v523_v6  ;;  %v522_v12 = vld [vmem:[#allocation8 + $0x1d8] sm:$0xff]  ;;  %588 = vmatpush.msra.mxu3 %v524_v8  ;;  %v487_v13 = vld [vmem:[#allocation8 + $0xc0] sm:$0xff]  ;;  %v488_v15 = vld [vmem:[#allocation8 + $0xc8] sm:$0xff]  ;;  %vm1372_vm11 = vcmask 1045508   ;;  %vm1354_vm12 = vcmask 1042433   ;;  %vm1383_vm13 = vcmask 1045504  }
  0x5d   : > { %v519_v14 = vld [vmem:[#allocation8 + $0x1c0] sm:$0xff]  ;;  %529 = vmatpush.msra.mxu0 %v489_v9  ;;  %v520_v16 = vld [vmem:[#allocation8 + $0x1c8] sm:$0xff]  ;;  %569 = vmatpush.msra.mxu2 %v490_v11  ;;  %v485_v17 = vld [vmem:[#allocation8 + $0xb0] sm:$0xff]  ;;  %vm1378_vm14 = vcmask 1046533   ;;  %vm1388_vm15 = vcmask 1046529   ;;  %s1812_s8 = sshll.u32 %s2385_s4, 3 }
  0x5e   : > { %549 = vmatpush.msra.mxu1 %v521_v10  ;;  %589 = vmatpush.msra.mxu3 %v522_v12  ;;  %v517_v18 = vld [vmem:[#allocation8 + $0x1b0] sm:$0xff]  ;;  %v486_v19 = vld [vmem:[#allocation8 + $0xb8] sm:$0xff]  ;;  %v483_v21 = vld [vmem:[#allocation8 + $0xa0] sm:$0xff]  ;;  %s1814_s22 = sshll.u32 %s2269_s17, 3  ;;  %s458_s17 = scalar_lea.vmem [#allocation14], %s1812_s8 }
  0x5f   : > { %530 = vmatpush.msra.mxu0 %v487_v13  ;;  %v518_v20 = vld [vmem:[#allocation8 + $0x1b8] sm:$0xff]  ;;  %570 = vmatpush.msra.mxu2 %v488_v15  ;;  %v515_v22 = vld [vmem:[#allocation8 + $0x1a0] sm:$0xff]  ;;  %v484_v23 = vld [vmem:[#allocation8 + $0xa8] sm:$0xff]  ;;  %s1656_s16 = scalar_lea.hbm %s2703_s9, %s1814_s22  ;;  %s1658_s20 = sshll.u32 %s458_s17, 4  ;;  %s1659_s20 = int_to_ptr.vmem [resolvable:$true] %s1658_s20 }
  0x60   : > { %550 = vmatpush.msra.mxu1 %v519_v14  ;;  %590 = vmatpush.msra.mxu3 %v520_v16  ;;  %v516_v24 = vld [vmem:[#allocation8 + $0x1a8] sm:$0xff]  ;;  %v481_v25 = vld [vmem:[#allocation8 + $0x90] sm:$0xff]  ;;  %v482_v27 = vld [vmem:[#allocation8 + $0x98] sm:$0xff]  ;;  %s1660_s25 = sshll.u32 %s1656_s16, 4  ;;  %s1646_s2 = scalar_lea.sflag [#allocation5], %s2385_s4  ;;  %s1661_s25 = int_to_ptr.hbm [resolvable:$true] %s1660_s25 }
  0x61   : > { %531 = vmatpush.msra.mxu0 %v485_v17  ;;  %571 = vmatpush.msra.mxu2 %v486_v19  ;;  %v513_v26 = vld [vmem:[#allocation8 + $0x190] sm:$0xff]  ;;  %v514_v28 = vld [vmem:[#allocation8 + $0x198] sm:$0xff]  ;;  %v479_v29 = vld [vmem:[#allocation8 + $0x80] sm:$0xff]  ;;  %s2113_s27 = sshra.s32 %s1661_s25, 4  ;;  %s2119_s13 = scalar_lea.hbm %s2703_s9, 16  ;;  %s2114_s27 = int_to_ptr.hbm [resolvable:$true] %s2113_s27 }
  0x62   : > { %551 = vmatpush.msra.mxu1 %v517_v18  ;;  %591 = vmatpush.msra.mxu3 %v518_v20  ;;  %v511_v30 = vld [vmem:[#allocation8 + $0x180] sm:$0xff]  ;;  %v480_v31 = vld [vmem:[#allocation8 + $0x88] sm:$0xff]  ;;  %v477_v33 = vld [vmem:[#allocation8 + $0x70] sm:$0xff]  ;;  %s2115_s5 = scalar_lea.hbm %s2114_s27, 8  ;;  %p2120_p7 = scmp.lt.s32.totalorder %s2114_s27, %s2703_s9 }
  0x63   : > { %532 = vmatpush.msra.mxu0 %v483_v21  ;;  %572 = vmatpush.msra.mxu2 %v484_v23  ;;  %v512_v32 = vld [vmem:[#allocation8 + $0x188] sm:$0xff]  ;;  %v509_v34 = vld [vmem:[#allocation8 + $0x170] sm:$0xff]  ;;  %v478_v35 = vld [vmem:[#allocation8 + $0x78] sm:$0xff]  ;;  %p2116_p1 = scmp.ne.s32.totalorder %s2114_s27, %s2115_s5  ;;  %p2121_p9 = scmp.lt.s32.totalorder %s2119_s13, %s2115_s5 }
  0x64   : > { %552 = vmatpush.msra.mxu1 %v515_v22  ;;  %592 = vmatpush.msra.mxu3 %v516_v24  ;;  %v510_v36 = vld [vmem:[#allocation8 + $0x178] sm:$0xff]  ;;  %v475_v37 = vld [vmem:[#allocation8 + $0x60] sm:$0xff]  ;;  %v476_v39 = vld [vmem:[#allocation8 + $0x68] sm:$0xff] }
  0x65   : > { %533 = vmatpush.msra.mxu0 %v481_v25  ;;  %573 = vmatpush.msra.mxu2 %v482_v27  ;;  %v507_v38 = vld [vmem:[#allocation8 + $0x160] sm:$0xff]  ;;  %v508_v40 = vld [vmem:[#allocation8 + $0x168] sm:$0xff]  ;;  %v473_v41 = vld [vmem:[#allocation8 + $0x50] sm:$0xff]  ;;  %p2117_p3 = pnand %p2116_p1, %p2332_p4  ;;  %p2122_p8 = por %p2121_p9, %p2120_p7 }
  0x66   : > { %553 = vmatpush.msra.mxu1 %v513_v26  ;;  %593 = vmatpush.msra.mxu3 %v514_v28  ;;  %v505_v42 = vld [vmem:[#allocation8 + $0x150] sm:$0xff]  ;;  %v474_v43 = vld [vmem:[#allocation8 + $0x58] sm:$0xff]  ;;  %v471_v45 = vld [vmem:[#allocation8 + $0x40] sm:$0xff] }
  0x67   : > { %534 = vmatpush.msra.mxu0 %v479_v29  ;;  %574 = vmatpush.msra.mxu2 %v480_v31  ;;  %v506_v44 = vld [vmem:[#allocation8 + $0x158] sm:$0xff]  ;;  %v503_v46 = vld [vmem:[#allocation8 + $0x140] sm:$0xff]  ;;  %v472_v47 = vld [vmem:[#allocation8 + $0x48] sm:$0xff]  ;;  %p2118_p12 = pneg %p2117_p3 }
  0x68   : > { %554 = vmatpush.msra.mxu1 %v511_v30  ;;  %594 = vmatpush.msra.mxu3 %v512_v32  ;;  %v504_v48 = vld [vmem:[#allocation8 + $0x148] sm:$0xff]  ;;  %v469_v49 = vld [vmem:[#allocation8 + $0x30] sm:$0xff]  ;;  %v470_v51 = vld [vmem:[#allocation8 + $0x38] sm:$0xff] }
  0x69   : > { %535 = vmatpush.msra.mxu0 %v477_v33  ;;  %575 = vmatpush.msra.mxu2 %v478_v35  ;;  %v501_v50 = vld [vmem:[#allocation8 + $0x130] sm:$0xff]  ;;  %v502_v52 = vld [vmem:[#allocation8 + $0x138] sm:$0xff]  ;;  %v467_v53 = vld [vmem:[#allocation8 + $0x20] sm:$0xff]  ;;  %p2123_p10 = pnand %p2122_p8, %p2118_p12 }
  0x6a   : > { %555 = vmatpush.msra.mxu1 %v509_v34  ;;  %595 = vmatpush.msra.mxu3 %v510_v36  ;;  %v499_v54 = vld [vmem:[#allocation8 + $0x120] sm:$0xff]  ;;  %v468_v55 = vld [vmem:[#allocation8 + $0x28] sm:$0xff]  ;;  %v465_v57 = vld [vmem:[#allocation8 + $0x10] sm:$0xff] }
  0x6b   : > { %536 = vmatpush.msra.mxu0 %v475_v37  ;;  %576 = vmatpush.msra.mxu2 %v476_v39  ;;  %v500_v56 = vld [vmem:[#allocation8 + $0x128] sm:$0xff]  ;;  %v497_v58 = vld [vmem:[#allocation8 + $0x110] sm:$0xff]  ;;  %v466_v59 = vld [vmem:[#allocation8 + $0x18] sm:$0xff] }
  0x6c   : > { %556 = vmatpush.msra.mxu1 %v507_v38  ;;  %596 = vmatpush.msra.mxu3 %v508_v40  ;;  %v498_v60 = vld [vmem:[#allocation8 + $0x118] sm:$0xff]  ;;  %v463_v61 = vld [vmem:[#allocation8] sm:$0xff]  ;;  %v464_v63 = vld [vmem:[#allocation8 + $0x8] sm:$0xff] }
  0x6d   : > { %537 = vmatpush.msra.mxu0 %v473_v41  ;;  %577 = vmatpush.msra.mxu2 %v474_v43  ;;  %v495_v62 = vld [vmem:[#allocation8 + $0x100] sm:$0xff]  ;;  %v496_v0 = vld [vmem:[#allocation8 + $0x108] sm:$0xff]  ;;  %v638_v3 = vld [vmem:[#allocation9 + $0xf8] sm:$0xff] }
  0x6e   : > { %557 = vmatpush.msra.mxu1 %v505_v42  ;;  %597 = vmatpush.msra.mxu3 %v506_v44  ;;  %v459_v1 = vld [vmem:[%s2389_s26] sm:$0xff]  ;;  %v460_v2 = vld [vmem:[%s2389_s26 + $0x8] sm:$0xff] }
  0x6f   : > { %538 = vmatpush.msra.mxu0 %v471_v45  ;;  %578 = vmatpush.msra.mxu2 %v472_v47  ;;  %v670_v4 = vld [vmem:[#allocation9 + $0x1f8] sm:$0xff]  ;;  %v637_v5 = vld [vmem:[#allocation9 + $0xf0] sm:$0xff]  ;;  %v636_v7 = vld [vmem:[#allocation9 + $0xe8] sm:$0xff] }
  0x70   : > { %558 = vmatpush.msra.mxu1 %v503_v46  ;;  %598 = vmatpush.msra.mxu3 %v504_v48  ;;  %v669_v6 = vld [vmem:[#allocation9 + $0x1f0] sm:$0xff]  ;;  %v668_v8 = vld [vmem:[#allocation9 + $0x1e8] sm:$0xff]  ;;  %v635_v9 = vld [vmem:[#allocation9 + $0xe0] sm:$0xff] }
  0x71   : > { %539 = vmatpush.msra.mxu0 %v469_v49  ;;  %579 = vmatpush.msra.mxu2 %v470_v51  ;;  %v667_v10 = vld [vmem:[#allocation9 + $0x1e0] sm:$0xff]  ;;  %v634_v11 = vld [vmem:[#allocation9 + $0xd8] sm:$0xff]  ;;  %v633_v13 = vld [vmem:[#allocation9 + $0xd0] sm:$0xff] }
  0x72   : > { %559 = vmatpush.msra.mxu1 %v501_v50  ;;  %599 = vmatpush.msra.mxu3 %v502_v52  ;;  %v666_v12 = vld [vmem:[#allocation9 + $0x1d8] sm:$0xff]  ;;  %v665_v14 = vld [vmem:[#allocation9 + $0x1d0] sm:$0xff]  ;;  %v632_v15 = vld [vmem:[#allocation9 + $0xc8] sm:$0xff] }
  0x73   : > { %540 = vmatpush.msra.mxu0 %v467_v53  ;;  %580 = vmatpush.msra.mxu2 %v468_v55  ;;  %v664_v16 = vld [vmem:[#allocation9 + $0x1c8] sm:$0xff]  ;;  %v631_v17 = vld [vmem:[#allocation9 + $0xc0] sm:$0xff]  ;;  %v630_v19 = vld [vmem:[#allocation9 + $0xb8] sm:$0xff] }
  0x74   : > { %560 = vmatpush.msra.mxu1 %v499_v54  ;;  %600 = vmatpush.msra.mxu3 %v500_v56  ;;  %v663_v18 = vld [vmem:[#allocation9 + $0x1c0] sm:$0xff]  ;;  %v662_v20 = vld [vmem:[#allocation9 + $0x1b8] sm:$0xff]  ;;  %v629_v21 = vld [vmem:[#allocation9 + $0xb0] sm:$0xff] }
  0x75   : > { %541 = vmatpush.msra.mxu0 %v465_v57  ;;  %581 = vmatpush.msra.mxu2 %v466_v59  ;;  %v661_v22 = vld [vmem:[#allocation9 + $0x1b0] sm:$0xff]  ;;  %v628_v23 = vld [vmem:[#allocation9 + $0xa8] sm:$0xff]  ;;  %v627_v25 = vld [vmem:[#allocation9 + $0xa0] sm:$0xff] }
  0x76   : > { %561 = vmatpush.msra.mxu1 %v497_v58  ;;  %601 = vmatpush.msra.mxu3 %v498_v60  ;;  %v660_v24 = vld [vmem:[#allocation9 + $0x1a8] sm:$0xff]  ;;  %v659_v26 = vld [vmem:[#allocation9 + $0x1a0] sm:$0xff]  ;;  %v626_v27 = vld [vmem:[#allocation9 + $0x98] sm:$0xff] }
  0x77   : > { %542 = vmatpush.msra.mxu0 %v463_v61  ;;  %582 = vmatpush.msra.mxu2 %v464_v63  ;;  %v658_v28 = vld [vmem:[#allocation9 + $0x198] sm:$0xff]  ;;  %v625_v29 = vld [vmem:[#allocation9 + $0x90] sm:$0xff]  ;;  %v624_v31 = vld [vmem:[#allocation9 + $0x88] sm:$0xff] }
  0x78   : > { %562 = vmatpush.msra.mxu1 %v495_v62  ;;  %602 = vmatpush.msra.mxu3 %v496_v0  ;;  %v657_v30 = vld [vmem:[#allocation9 + $0x190] sm:$0xff]  ;;  %v656_v32 = vld [vmem:[#allocation9 + $0x188] sm:$0xff]  ;;  %v623_v33 = vld [vmem:[#allocation9 + $0x80] sm:$0xff] }
  0x79   : > { %543 = vmatmul.f32.vlgmr.msra.gmra.mxu0 %v459_v1  ;;  %563 = vmatmul.f32.vlgmr.msra.gmra.mxu1 %v460_v2  ;;  %v655_v34 = vld [vmem:[#allocation9 + $0x180] sm:$0xff]  ;;  %v622_v35 = vld [vmem:[#allocation9 + $0x78] sm:$0xff]  ;;  %v621_v37 = vld [vmem:[#allocation9 + $0x70] sm:$0xff] }
  0x7a   : > { %583 = vmatmul.f32.vlgmr.msra.gmra.mxu2 %v459_v1  ;;  %603 = vmatmul.f32.vlgmr.msra.gmra.mxu3 %v460_v2  ;;  %v654_v36 = vld [vmem:[#allocation9 + $0x178] sm:$0xff]  ;;  %v653_v38 = vld [vmem:[#allocation9 + $0x170] sm:$0xff]  ;;  %v620_v39 = vld [vmem:[#allocation9 + $0x68] sm:$0xff] }
  0x7b   : > { %711 = vmatpush.msrb.mxu2 %v638_v3  ;;  %731 = vmatpush.msrb.mxu3 %v670_v4  ;;  %v652_v40 = vld [vmem:[#allocation9 + $0x168] sm:$0xff]  ;;  %v619_v41 = vld [vmem:[#allocation9 + $0x60] sm:$0xff]  ;;  %v618_v43 = vld [vmem:[#allocation9 + $0x58] sm:$0xff] }
  0x7c   : > { %671 = vmatpush.msrb.mxu0 %v637_v5  ;;  %691 = vmatpush.msrb.mxu1 %v669_v6  ;;  %v651_v42 = vld [vmem:[#allocation9 + $0x160] sm:$0xff]  ;;  %v650_v44 = vld [vmem:[#allocation9 + $0x158] sm:$0xff]  ;;  %v617_v45 = vld [vmem:[#allocation9 + $0x50] sm:$0xff] }
  0x7d   : > { %712 = vmatpush.msrb.mxu2 %v636_v7  ;;  %732 = vmatpush.msrb.mxu3 %v668_v8  ;;  %v649_v46 = vld [vmem:[#allocation9 + $0x150] sm:$0xff]  ;;  %v616_v47 = vld [vmem:[#allocation9 + $0x48] sm:$0xff]  ;;  %v615_v49 = vld [vmem:[#allocation9 + $0x40] sm:$0xff] }
  0x7e   : > { %672 = vmatpush.msrb.mxu0 %v635_v9  ;;  %692 = vmatpush.msrb.mxu1 %v667_v10  ;;  %v648_v48 = vld [vmem:[#allocation9 + $0x148] sm:$0xff]  ;;  %v647_v50 = vld [vmem:[#allocation9 + $0x140] sm:$0xff]  ;;  %v614_v51 = vld [vmem:[#allocation9 + $0x38] sm:$0xff] }
  0x7f   : > { %713 = vmatpush.msrb.mxu2 %v634_v11  ;;  %733 = vmatpush.msrb.mxu3 %v666_v12  ;;  %v646_v52 = vld [vmem:[#allocation9 + $0x138] sm:$0xff]  ;;  %v613_v53 = vld [vmem:[#allocation9 + $0x30] sm:$0xff]  ;;  %v612_v55 = vld [vmem:[#allocation9 + $0x28] sm:$0xff] }
  0x80   : > { %673 = vmatpush.msrb.mxu0 %v633_v13  ;;  %693 = vmatpush.msrb.mxu1 %v665_v14  ;;  %v645_v54 = vld [vmem:[#allocation9 + $0x130] sm:$0xff]  ;;  %v644_v56 = vld [vmem:[#allocation9 + $0x128] sm:$0xff]  ;;  %v611_v57 = vld [vmem:[#allocation9 + $0x20] sm:$0xff] }
  0x81   : > { %714 = vmatpush.msrb.mxu2 %v632_v15  ;;  %734 = vmatpush.msrb.mxu3 %v664_v16  ;;  %v643_v58 = vld [vmem:[#allocation9 + $0x120] sm:$0xff]  ;;  %v610_v59 = vld [vmem:[#allocation9 + $0x18] sm:$0xff]  ;;  %v609_v61 = vld [vmem:[#allocation9 + $0x10] sm:$0xff] }
  0x82   : > { %674 = vmatpush.msrb.mxu0 %v631_v17  ;;  %694 = vmatpush.msrb.mxu1 %v663_v18  ;;  %v642_v60 = vld [vmem:[#allocation9 + $0x118] sm:$0xff]  ;;  %v641_v62 = vld [vmem:[#allocation9 + $0x110] sm:$0xff]  ;;  %v608_v63 = vld [vmem:[#allocation9 + $0x8] sm:$0xff] }
  0x83   : > { %715 = vmatpush.msrb.mxu2 %v630_v19  ;;  %735 = vmatpush.msrb.mxu3 %v662_v20  ;;  %v640_v0 = vld [vmem:[#allocation9 + $0x108] sm:$0xff]  ;;  %v461_v1 = vld [vmem:[%s2396_s28] sm:$0xff] }
  0x84   : > { %675 = vmatpush.msrb.mxu0 %v629_v21  ;;  %695 = vmatpush.msrb.mxu1 %v661_v22  ;;  %v462_v2 = vld [vmem:[%s2396_s28 + $0x8] sm:$0xff]  ;;  %v607_v3 = vld [vmem:[#allocation9] sm:$0xff] }
  0x85   : > { %716 = vmatpush.msrb.mxu2 %v628_v23  ;;  %736 = vmatpush.msrb.mxu3 %v660_v24  ;;  %v639_v4 = vld [vmem:[#allocation9 + $0x100] sm:$0xff]  ;;  %v812_v6 = vld [vmem:[#allocation11 + $0x1e8] sm:$0xff] }
  0x86   : > { %676 = vmatpush.msrb.mxu0 %v627_v25  ;;  %696 = vmatpush.msrb.mxu1 %v659_v26  ;;  %v811_v5 = vld [vmem:[#allocation11 + $0x1e0] sm:$0xff]  ;;  %v876_v8 = vld [vmem:[#allocation11 + $0x3e8] sm:$0xff] }
  0x87   : > { %717 = vmatpush.msrb.mxu2 %v626_v27  ;;  %737 = vmatpush.msrb.mxu3 %v658_v28  ;;  %v875_v7 = vld [vmem:[#allocation11 + $0x3e0] sm:$0xff]  ;;  %v808_v10 = vld [vmem:[#allocation11 + $0x1c8] sm:$0xff] }
  0x88   : > { %677 = vmatpush.msrb.mxu0 %v625_v29  ;;  %697 = vmatpush.msrb.mxu1 %v657_v30  ;;  %v807_v9 = vld [vmem:[#allocation11 + $0x1c0] sm:$0xff]  ;;  %v872_v12 = vld [vmem:[#allocation11 + $0x3c8] sm:$0xff] }
  0x89   : > { %718 = vmatpush.msrb.mxu2 %v624_v31  ;;  %738 = vmatpush.msrb.mxu3 %v656_v32  ;;  %v871_v11 = vld [vmem:[#allocation11 + $0x3c0] sm:$0xff]  ;;  %v804_v14 = vld [vmem:[#allocation11 + $0x1a8] sm:$0xff] }
  0x8a   : > { %678 = vmatpush.msrb.mxu0 %v623_v33  ;;  %698 = vmatpush.msrb.mxu1 %v655_v34  ;;  %v803_v13 = vld [vmem:[#allocation11 + $0x1a0] sm:$0xff]  ;;  %v868_v16 = vld [vmem:[#allocation11 + $0x3a8] sm:$0xff] }
  0x8b   : > { %719 = vmatpush.msrb.mxu2 %v622_v35  ;;  %739 = vmatpush.msrb.mxu3 %v654_v36  ;;  %v867_v15 = vld [vmem:[#allocation11 + $0x3a0] sm:$0xff]  ;;  %v800_v18 = vld [vmem:[#allocation11 + $0x188] sm:$0xff] }
  0x8c   : > { %679 = vmatpush.msrb.mxu0 %v621_v37  ;;  %699 = vmatpush.msrb.mxu1 %v653_v38  ;;  %v799_v17 = vld [vmem:[#allocation11 + $0x180] sm:$0xff]  ;;  %v864_v20 = vld [vmem:[#allocation11 + $0x388] sm:$0xff] }
  0x8d   : > { %720 = vmatpush.msrb.mxu2 %v620_v39  ;;  %740 = vmatpush.msrb.mxu3 %v652_v40  ;;  %v863_v19 = vld [vmem:[#allocation11 + $0x380] sm:$0xff]  ;;  %v796_v22 = vld [vmem:[#allocation11 + $0x168] sm:$0xff] }
  0x8e   : > { %680 = vmatpush.msrb.mxu0 %v619_v41  ;;  %700 = vmatpush.msrb.mxu1 %v651_v42  ;;  %v795_v21 = vld [vmem:[#allocation11 + $0x160] sm:$0xff]  ;;  %v860_v24 = vld [vmem:[#allocation11 + $0x368] sm:$0xff] }
  0x8f   : > { %721 = vmatpush.msrb.mxu2 %v618_v43  ;;  %741 = vmatpush.msrb.mxu3 %v650_v44  ;;  %v859_v23 = vld [vmem:[#allocation11 + $0x360] sm:$0xff]  ;;  %v792_v26 = vld [vmem:[#allocation11 + $0x148] sm:$0xff] }
  0x90   : > { %681 = vmatpush.msrb.mxu0 %v617_v45  ;;  %701 = vmatpush.msrb.mxu1 %v649_v46  ;;  %v791_v25 = vld [vmem:[#allocation11 + $0x140] sm:$0xff]  ;;  %v856_v28 = vld [vmem:[#allocation11 + $0x348] sm:$0xff] }
  0x91   : > { %722 = vmatpush.msrb.mxu2 %v616_v47  ;;  %742 = vmatpush.msrb.mxu3 %v648_v48  ;;  %v855_v27 = vld [vmem:[#allocation11 + $0x340] sm:$0xff]  ;;  %v788_v30 = vld [vmem:[#allocation11 + $0x128] sm:$0xff] }
  0x92   : > { %682 = vmatpush.msrb.mxu0 %v615_v49  ;;  %702 = vmatpush.msrb.mxu1 %v647_v50  ;;  %v787_v29 = vld [vmem:[#allocation11 + $0x120] sm:$0xff]  ;;  %v852_v32 = vld [vmem:[#allocation11 + $0x328] sm:$0xff] }
  0x93   : > { %723 = vmatpush.msrb.mxu2 %v614_v51  ;;  %743 = vmatpush.msrb.mxu3 %v646_v52  ;;  %v851_v31 = vld [vmem:[#allocation11 + $0x320] sm:$0xff]  ;;  %v784_v34 = vld [vmem:[#allocation11 + $0x108] sm:$0xff] }
  0x94   : > { %683 = vmatpush.msrb.mxu0 %v613_v53  ;;  %703 = vmatpush.msrb.mxu1 %v645_v54  ;;  %v783_v33 = vld [vmem:[#allocation11 + $0x100] sm:$0xff]  ;;  %v848_v36 = vld [vmem:[#allocation11 + $0x308] sm:$0xff] }
  0x95   : > { %724 = vmatpush.msrb.mxu2 %v612_v55  ;;  %744 = vmatpush.msrb.mxu3 %v644_v56  ;;  %v847_v35 = vld [vmem:[#allocation11 + $0x300] sm:$0xff]  ;;  %v780_v38 = vld [vmem:[#allocation11 + $0xe8] sm:$0xff] }
  0x96   : > { %684 = vmatpush.msrb.mxu0 %v611_v57  ;;  %704 = vmatpush.msrb.mxu1 %v643_v58  ;;  %v779_v37 = vld [vmem:[#allocation11 + $0xe0] sm:$0xff]  ;;  %v844_v40 = vld [vmem:[#allocation11 + $0x2e8] sm:$0xff] }
  0x97   : > { %725 = vmatpush.msrb.mxu2 %v610_v59  ;;  %745 = vmatpush.msrb.mxu3 %v642_v60  ;;  %v843_v39 = vld [vmem:[#allocation11 + $0x2e0] sm:$0xff]  ;;  %v776_v42 = vld [vmem:[#allocation11 + $0xc8] sm:$0xff] }
  0x98   : > { %685 = vmatpush.msrb.mxu0 %v609_v61  ;;  %705 = vmatpush.msrb.mxu1 %v641_v62  ;;  %v775_v41 = vld [vmem:[#allocation11 + $0xc0] sm:$0xff]  ;;  %v840_v44 = vld [vmem:[#allocation11 + $0x2c8] sm:$0xff] }
  0x99   : > { %726 = vmatpush.msrb.mxu2 %v608_v63  ;;  %746 = vmatpush.msrb.mxu3 %v640_v0  ;;  %v839_v43 = vld [vmem:[#allocation11 + $0x2c0] sm:$0xff]  ;;  %v772_v46 = vld [vmem:[#allocation11 + $0xa8] sm:$0xff] }
  0x9a   : > { %727 = vmatmul.f32.vlgmr.msrb.gmra.mxu2 %v461_v1  ;;  %747 = vmatmul.f32.vlgmr.msrb.gmra.mxu3 %v462_v2  ;;  %v771_v45 = vld [vmem:[#allocation11 + $0xa0] sm:$0xff]  ;;  %v836_v48 = vld [vmem:[#allocation11 + $0x2a8] sm:$0xff] }
  0x9b   : > { %686 = vmatpush.msrb.mxu0 %v607_v3  ;;  %706 = vmatpush.msrb.mxu1 %v639_v4  ;;  %v835_v47 = vld [vmem:[#allocation11 + $0x2a0] sm:$0xff]  ;;  %v768_v50 = vld [vmem:[#allocation11 + $0x88] sm:$0xff]  ;;  %v813_v3 = vld [vmem:[#allocation11 + $0x1f0] sm:$0xff] }
  0x9c   : > { %687 = vmatmul.f32.vlgmr.msrb.gmra.mxu0 %v461_v1  ;;  %707 = vmatmul.f32.vlgmr.msrb.gmra.mxu1 %v462_v2  ;;  %v767_v49 = vld [vmem:[#allocation11 + $0x80] sm:$0xff]  ;;  %v832_v52 = vld [vmem:[#allocation11 + $0x288] sm:$0xff]  ;;  %v814_v4 = vld [vmem:[#allocation11 + $0x1f8] sm:$0xff] }
  0x9d   : > { %879 = vmatpush.msra.mxu0 %v811_v5  ;;  %919 = vmatpush.msra.mxu2 %v812_v6  ;;  %v831_v51 = vld [vmem:[#allocation11 + $0x280] sm:$0xff]  ;;  %v764_v54 = vld [vmem:[#allocation11 + $0x68] sm:$0xff] }
  0x9e   : > { %899 = vmatpush.msra.mxu1 %v875_v7  ;;  %939 = vmatpush.msra.mxu3 %v876_v8  ;;  %v763_v53 = vld [vmem:[#allocation11 + $0x60] sm:$0xff]  ;;  %v828_v56 = vld [vmem:[#allocation11 + $0x268] sm:$0xff]  ;;  %v809_v7 = vld [vmem:[#allocation11 + $0x1d0] sm:$0xff] }
  0x9f   : > { %880 = vmatpush.msra.mxu0 %v807_v9  ;;  %920 = vmatpush.msra.mxu2 %v808_v10  ;;  %v827_v55 = vld [vmem:[#allocation11 + $0x260] sm:$0xff]  ;;  %v760_v58 = vld [vmem:[#allocation11 + $0x48] sm:$0xff]  ;;  %v810_v8 = vld [vmem:[#allocation11 + $0x1d8] sm:$0xff] }
  0xa0   : > { %900 = vmatpush.msra.mxu1 %v871_v11  ;;  %940 = vmatpush.msra.mxu3 %v872_v12  ;;  %v759_v57 = vld [vmem:[#allocation11 + $0x40] sm:$0xff]  ;;  %v824_v60 = vld [vmem:[#allocation11 + $0x248] sm:$0xff]  ;;  %v877_v9 = vld [vmem:[#allocation11 + $0x3f0] sm:$0xff] }
  0xa1   : > { %881 = vmatpush.msra.mxu0 %v803_v13  ;;  %921 = vmatpush.msra.mxu2 %v804_v14  ;;  %v823_v59 = vld [vmem:[#allocation11 + $0x240] sm:$0xff]  ;;  %v756_v62 = vld [vmem:[#allocation11 + $0x28] sm:$0xff]  ;;  %v878_v10 = vld [vmem:[#allocation11 + $0x3f8] sm:$0xff] }
  0xa2   : > { %901 = vmatpush.msra.mxu1 %v867_v15  ;;  %941 = vmatpush.msra.mxu3 %v868_v16  ;;  %v755_v61 = vld [vmem:[#allocation11 + $0x20] sm:$0xff]  ;;  %v820_v0 = vld [vmem:[#allocation11 + $0x228] sm:$0xff]  ;;  %v805_v11 = vld [vmem:[#allocation11 + $0x1b0] sm:$0xff] }
  0xa3   : > { %882 = vmatpush.msra.mxu0 %v799_v17  ;;  %922 = vmatpush.msra.mxu2 %v800_v18  ;;  %v819_v63 = vld [vmem:[#allocation11 + $0x220] sm:$0xff]  ;;  %v752_v2 = vld [vmem:[#allocation11 + $0x8] sm:$0xff]  ;;  %v806_v12 = vld [vmem:[#allocation11 + $0x1b8] sm:$0xff] }
  0xa4   : > { %902 = vmatpush.msra.mxu1 %v863_v19  ;;  %942 = vmatpush.msra.mxu3 %v864_v20  ;;  %v751_v1 = vld [vmem:[#allocation11] sm:$0xff]  ;;  %v816_v6 = vld [vmem:[#allocation11 + $0x208] sm:$0xff]  ;;  %v873_v13 = vld [vmem:[#allocation11 + $0x3d0] sm:$0xff] }
  0xa5   : > { %883 = vmatpush.msra.mxu0 %v795_v21  ;;  %923 = vmatpush.msra.mxu2 %v796_v22  ;;  %v815_v5 = vld [vmem:[#allocation11 + $0x200] sm:$0xff]  ;;  %v874_v14 = vld [vmem:[#allocation11 + $0x3d8] sm:$0xff]  ;;  %v801_v15 = vld [vmem:[#allocation11 + $0x190] sm:$0xff] }
  0xa6   : > { %903 = vmatpush.msra.mxu1 %v859_v23  ;;  %943 = vmatpush.msra.mxu3 %v860_v24  ;;  %v802_v16 = vld [vmem:[#allocation11 + $0x198] sm:$0xff]  ;;  %v869_v17 = vld [vmem:[#allocation11 + $0x3b0] sm:$0xff] }
  0xa7   : > { %884 = vmatpush.msra.mxu0 %v791_v25  ;;  %924 = vmatpush.msra.mxu2 %v792_v26  ;;  %v870_v18 = vld [vmem:[#allocation11 + $0x3b8] sm:$0xff]  ;;  %v797_v19 = vld [vmem:[#allocation11 + $0x170] sm:$0xff] }
  0xa8   : > { %904 = vmatpush.msra.mxu1 %v855_v27  ;;  %944 = vmatpush.msra.mxu3 %v856_v28  ;;  %v798_v20 = vld [vmem:[#allocation11 + $0x178] sm:$0xff]  ;;  %v865_v21 = vld [vmem:[#allocation11 + $0x390] sm:$0xff] }
  0xa9   : > { %885 = vmatpush.msra.mxu0 %v787_v29  ;;  %925 = vmatpush.msra.mxu2 %v788_v30  ;;  %v866_v22 = vld [vmem:[#allocation11 + $0x398] sm:$0xff]  ;;  %v793_v23 = vld [vmem:[#allocation11 + $0x150] sm:$0xff] }
  0xaa   : > { %905 = vmatpush.msra.mxu1 %v851_v31  ;;  %945 = vmatpush.msra.mxu3 %v852_v32  ;;  %v794_v24 = vld [vmem:[#allocation11 + $0x158] sm:$0xff]  ;;  %v861_v25 = vld [vmem:[#allocation11 + $0x370] sm:$0xff] }
  0xab   : > { %886 = vmatpush.msra.mxu0 %v783_v33  ;;  %926 = vmatpush.msra.mxu2 %v784_v34  ;;  %v862_v26 = vld [vmem:[#allocation11 + $0x378] sm:$0xff]  ;;  %v789_v27 = vld [vmem:[#allocation11 + $0x130] sm:$0xff] }
  0xac   : > { %906 = vmatpush.msra.mxu1 %v847_v35  ;;  %946 = vmatpush.msra.mxu3 %v848_v36  ;;  %v790_v28 = vld [vmem:[#allocation11 + $0x138] sm:$0xff]  ;;  %v857_v29 = vld [vmem:[#allocation11 + $0x350] sm:$0xff] }
  0xad   : > { %887 = vmatpush.msra.mxu0 %v779_v37  ;;  %927 = vmatpush.msra.mxu2 %v780_v38  ;;  %v858_v30 = vld [vmem:[#allocation11 + $0x358] sm:$0xff]  ;;  %v785_v31 = vld [vmem:[#allocation11 + $0x110] sm:$0xff] }
  0xae   : > { %907 = vmatpush.msra.mxu1 %v843_v39  ;;  %947 = vmatpush.msra.mxu3 %v844_v40  ;;  %v786_v32 = vld [vmem:[#allocation11 + $0x118] sm:$0xff]  ;;  %v853_v33 = vld [vmem:[#allocation11 + $0x330] sm:$0xff] }
  0xaf   : > { %888 = vmatpush.msra.mxu0 %v775_v41  ;;  %928 = vmatpush.msra.mxu2 %v776_v42  ;;  %v854_v34 = vld [vmem:[#allocation11 + $0x338] sm:$0xff]  ;;  %v781_v35 = vld [vmem:[#allocation11 + $0xf0] sm:$0xff] }
  0xb0   : > { %908 = vmatpush.msra.mxu1 %v839_v43  ;;  %948 = vmatpush.msra.mxu3 %v840_v44  ;;  %v782_v36 = vld [vmem:[#allocation11 + $0xf8] sm:$0xff]  ;;  %v849_v37 = vld [vmem:[#allocation11 + $0x310] sm:$0xff] }
  0xb1   : > { %889 = vmatpush.msra.mxu0 %v771_v45  ;;  %929 = vmatpush.msra.mxu2 %v772_v46  ;;  %v850_v38 = vld [vmem:[#allocation11 + $0x318] sm:$0xff]  ;;  %v777_v39 = vld [vmem:[#allocation11 + $0xd0] sm:$0xff] }
  0xb2   : > { %909 = vmatpush.msra.mxu1 %v835_v47  ;;  %949 = vmatpush.msra.mxu3 %v836_v48  ;;  %v778_v40 = vld [vmem:[#allocation11 + $0xd8] sm:$0xff]  ;;  %v845_v41 = vld [vmem:[#allocation11 + $0x2f0] sm:$0xff] }
  0xb3   : > { %890 = vmatpush.msra.mxu0 %v767_v49  ;;  %930 = vmatpush.msra.mxu2 %v768_v50  ;;  %v846_v42 = vld [vmem:[#allocation11 + $0x2f8] sm:$0xff]  ;;  %v773_v43 = vld [vmem:[#allocation11 + $0xb0] sm:$0xff] }
  0xb4   : > { %910 = vmatpush.msra.mxu1 %v831_v51  ;;  %950 = vmatpush.msra.mxu3 %v832_v52  ;;  %v774_v44 = vld [vmem:[#allocation11 + $0xb8] sm:$0xff]  ;;  %v841_v45 = vld [vmem:[#allocation11 + $0x2d0] sm:$0xff] }
  0xb5   : > { %891 = vmatpush.msra.mxu0 %v763_v53  ;;  %931 = vmatpush.msra.mxu2 %v764_v54  ;;  %v842_v46 = vld [vmem:[#allocation11 + $0x2d8] sm:$0xff]  ;;  %v769_v47 = vld [vmem:[#allocation11 + $0x90] sm:$0xff] }
  0xb6   : > { %911 = vmatpush.msra.mxu1 %v827_v55  ;;  %951 = vmatpush.msra.mxu3 %v828_v56  ;;  %v770_v48 = vld [vmem:[#allocation11 + $0x98] sm:$0xff]  ;;  %v837_v49 = vld [vmem:[#allocation11 + $0x2b0] sm:$0xff] }
  0xb7   : > { %892 = vmatpush.msra.mxu0 %v759_v57  ;;  %932 = vmatpush.msra.mxu2 %v760_v58  ;;  %v838_v50 = vld [vmem:[#allocation11 + $0x2b8] sm:$0xff]  ;;  %v765_v51 = vld [vmem:[#allocation11 + $0x70] sm:$0xff] }
  0xb8   : > { %912 = vmatpush.msra.mxu1 %v823_v59  ;;  %952 = vmatpush.msra.mxu3 %v824_v60  ;;  %v766_v52 = vld [vmem:[#allocation11 + $0x78] sm:$0xff]  ;;  %v761_v53 = vld [vmem:[#allocation11 + $0x50] sm:$0xff] }
  0xb9   : > { %893 = vmatpush.msra.mxu0 %v755_v61  ;;  %933 = vmatpush.msra.mxu2 %v756_v62  ;;  %v762_v54 = vld [vmem:[#allocation11 + $0x58] sm:$0xff]  ;;  %v757_v55 = vld [vmem:[#allocation11 + $0x30] sm:$0xff] }
  0xba   : > { %913 = vmatpush.msra.mxu1 %v819_v63  ;;  %953 = vmatpush.msra.mxu3 %v820_v0  ;;  %v833_v56 = vld [vmem:[#allocation11 + $0x290] sm:$0xff]  ;;  %v758_v57 = vld [vmem:[#allocation11 + $0x38] sm:$0xff] }
  0xbb   : > { %894 = vmatpush.msra.mxu0 %v751_v1  ;;  %934 = vmatpush.msra.mxu2 %v752_v2  ;;  %v834_v58 = vld [vmem:[#allocation11 + $0x298] sm:$0xff]  ;;  %v753_v59 = vld [vmem:[#allocation11 + $0x10] sm:$0xff] }
  0xbc   : > { %914 = vmatpush.msra.mxu1 %v815_v5  ;;  %954 = vmatpush.msra.mxu3 %v816_v6  ;;  %v829_v60 = vld [vmem:[#allocation11 + $0x270] sm:$0xff]  ;;  %v754_v61 = vld [vmem:[#allocation11 + $0x18] sm:$0xff] }
  0xbd   : > { %959 = vmatpush.msrb.mxu0 %v813_v3  ;;  %999 = vmatpush.msrb.mxu2 %v814_v4  ;;  %v830_v62 = vld [vmem:[#allocation11 + $0x278] sm:$0xff]  ;;  %v825_v63 = vld [vmem:[#allocation11 + $0x250] sm:$0xff] }
  0xbe   : > { %979 = vmatpush.msrb.mxu1 %v877_v9  ;;  %1019 = vmatpush.msrb.mxu3 %v878_v10  ;;  %v826_v0 = vld [vmem:[#allocation11 + $0x258] sm:$0xff]  ;;  %v821_v1 = vld [vmem:[#allocation11 + $0x230] sm:$0xff]  ;;  %v1100_v9 = vld [vmem:[#allocation12 + $0x1e8] sm:$0xff] }
  0xbf   : > { %960 = vmatpush.msrb.mxu0 %v809_v7  ;;  %1000 = vmatpush.msrb.mxu2 %v810_v8  ;;  %v822_v2 = vld [vmem:[#allocation11 + $0x238] sm:$0xff]  ;;  %v817_v3 = vld [vmem:[#allocation11 + $0x210] sm:$0xff]  ;;  %v1099_v8 = vld [vmem:[#allocation12 + $0x1e0] sm:$0xff] }
  0xc0   : > { %980 = vmatpush.msrb.mxu1 %v873_v13  ;;  %1020 = vmatpush.msrb.mxu3 %v874_v14  ;;  %v818_v4 = vld [vmem:[#allocation11 + $0x218] sm:$0xff]  ;;  %v1095_v10 = vld [vmem:[#allocation12 + $0x1c0] sm:$0xff]  ;;  %v1092_v13 = vld [vmem:[#allocation12 + $0x1a8] sm:$0xff] }
  0xc1   : > { %961 = vmatpush.msrb.mxu0 %v805_v11  ;;  %1001 = vmatpush.msrb.mxu2 %v806_v12  ;;  %v1096_v11 = vld [vmem:[#allocation12 + $0x1c8] sm:$0xff]  ;;  %v1091_v12 = vld [vmem:[#allocation12 + $0x1a0] sm:$0xff] }
  0xc2   : > { %981 = vmatpush.msrb.mxu1 %v869_v17  ;;  %1021 = vmatpush.msrb.mxu3 %v870_v18  ;;  %v1087_v17 = vld [vmem:[#allocation12 + $0x180] sm:$0xff] }
  0xc3   : > { %962 = vmatpush.msrb.mxu0 %v801_v15  ;;  %1002 = vmatpush.msrb.mxu2 %v802_v16  ;;  %v1163_v18 = vld [vmem:[#allocation12 + $0x3e0] sm:$0xff] }
  0xc4   : > { %982 = vmatpush.msrb.mxu1 %v865_v21  ;;  %1022 = vmatpush.msrb.mxu3 %v866_v22  ;;  %v1083_v21 = vld [vmem:[#allocation12 + $0x160] sm:$0xff] }
  0xc5   : > { %963 = vmatpush.msrb.mxu0 %v797_v19  ;;  %1003 = vmatpush.msrb.mxu2 %v798_v20  ;;  %v1088_v19 = vld [vmem:[#allocation12 + $0x188] sm:$0xff]  ;;  %v1159_v22 = vld [vmem:[#allocation12 + $0x3c0] sm:$0xff] }
  0xc6   : > { %983 = vmatpush.msrb.mxu1 %v861_v25  ;;  %1023 = vmatpush.msrb.mxu3 %v862_v26  ;;  %v1164_v20 = vld [vmem:[#allocation12 + $0x3e8] sm:$0xff]  ;;  %v1079_v25 = vld [vmem:[#allocation12 + $0x140] sm:$0xff] }
  0xc7   : > { %964 = vmatpush.msrb.mxu0 %v793_v23  ;;  %1004 = vmatpush.msrb.mxu2 %v794_v24  ;;  %v1084_v23 = vld [vmem:[#allocation12 + $0x168] sm:$0xff]  ;;  %v1155_v26 = vld [vmem:[#allocation12 + $0x3a0] sm:$0xff] }
  0xc8   : > { %984 = vmatpush.msrb.mxu1 %v857_v29  ;;  %1024 = vmatpush.msrb.mxu3 %v858_v30  ;;  %v1160_v24 = vld [vmem:[#allocation12 + $0x3c8] sm:$0xff]  ;;  %v1075_v29 = vld [vmem:[#allocation12 + $0x120] sm:$0xff] }
  0xc9   : > { %965 = vmatpush.msrb.mxu0 %v789_v27  ;;  %1005 = vmatpush.msrb.mxu2 %v790_v28  ;;  %v1080_v27 = vld [vmem:[#allocation12 + $0x148] sm:$0xff]  ;;  %v1151_v30 = vld [vmem:[#allocation12 + $0x380] sm:$0xff] }
  0xca   : > { %985 = vmatpush.msrb.mxu1 %v853_v33  ;;  %1025 = vmatpush.msrb.mxu3 %v854_v34  ;;  %v1156_v28 = vld [vmem:[#allocation12 + $0x3a8] sm:$0xff]  ;;  %v1071_v33 = vld [vmem:[#allocation12 + $0x100] sm:$0xff] }
  0xcb   : > { %966 = vmatpush.msrb.mxu0 %v785_v31  ;;  %1006 = vmatpush.msrb.mxu2 %v786_v32  ;;  %v1076_v31 = vld [vmem:[#allocation12 + $0x128] sm:$0xff]  ;;  %v1147_v34 = vld [vmem:[#allocation12 + $0x360] sm:$0xff] }
  0xcc   : > { %986 = vmatpush.msrb.mxu1 %v849_v37  ;;  %1026 = vmatpush.msrb.mxu3 %v850_v38  ;;  %v1152_v32 = vld [vmem:[#allocation12 + $0x388] sm:$0xff]  ;;  %v1067_v37 = vld [vmem:[#allocation12 + $0xe0] sm:$0xff] }
  0xcd   : > { %967 = vmatpush.msrb.mxu0 %v781_v35  ;;  %1007 = vmatpush.msrb.mxu2 %v782_v36  ;;  %v1072_v35 = vld [vmem:[#allocation12 + $0x108] sm:$0xff]  ;;  %v1143_v38 = vld [vmem:[#allocation12 + $0x340] sm:$0xff] }
  0xce   : > { %987 = vmatpush.msrb.mxu1 %v845_v41  ;;  %1027 = vmatpush.msrb.mxu3 %v846_v42  ;;  %v1148_v36 = vld [vmem:[#allocation12 + $0x368] sm:$0xff]  ;;  %v1063_v41 = vld [vmem:[#allocation12 + $0xc0] sm:$0xff] }
  0xcf   : > { %968 = vmatpush.msrb.mxu0 %v777_v39  ;;  %1008 = vmatpush.msrb.mxu2 %v778_v40  ;;  %v1068_v39 = vld [vmem:[#allocation12 + $0xe8] sm:$0xff]  ;;  %v1139_v42 = vld [vmem:[#allocation12 + $0x320] sm:$0xff] }
  0xd0   : > { %988 = vmatpush.msrb.mxu1 %v841_v45  ;;  %1028 = vmatpush.msrb.mxu3 %v842_v46  ;;  %v1144_v40 = vld [vmem:[#allocation12 + $0x348] sm:$0xff]  ;;  %v1059_v45 = vld [vmem:[#allocation12 + $0xa0] sm:$0xff] }
  0xd1   : > { %969 = vmatpush.msrb.mxu0 %v773_v43  ;;  %1009 = vmatpush.msrb.mxu2 %v774_v44  ;;  %v1064_v43 = vld [vmem:[#allocation12 + $0xc8] sm:$0xff]  ;;  %v1135_v46 = vld [vmem:[#allocation12 + $0x300] sm:$0xff] }
  0xd2   : > { %989 = vmatpush.msrb.mxu1 %v837_v49  ;;  %1029 = vmatpush.msrb.mxu3 %v838_v50  ;;  %v1140_v44 = vld [vmem:[#allocation12 + $0x328] sm:$0xff]  ;;  %v1055_v49 = vld [vmem:[#allocation12 + $0x80] sm:$0xff] }
  0xd3   : > { %970 = vmatpush.msrb.mxu0 %v769_v47  ;;  %1010 = vmatpush.msrb.mxu2 %v770_v48  ;;  %v1060_v47 = vld [vmem:[#allocation12 + $0xa8] sm:$0xff]  ;;  %v1131_v50 = vld [vmem:[#allocation12 + $0x2e0] sm:$0xff] }
  0xd4   : > { %990 = vmatpush.msrb.mxu1 %v833_v56  ;;  %1030 = vmatpush.msrb.mxu3 %v834_v58  ;;  %v1136_v48 = vld [vmem:[#allocation12 + $0x308] sm:$0xff]  ;;  %v1123_v58 = vld [vmem:[#allocation12 + $0x2a0] sm:$0xff] }
  0xd5   : > { %971 = vmatpush.msrb.mxu0 %v765_v51  ;;  %1011 = vmatpush.msrb.mxu2 %v766_v52  ;;  %v1056_v51 = vld [vmem:[#allocation12 + $0x88] sm:$0xff] }
  0xd6   : > { %991 = vmatpush.msrb.mxu1 %v829_v60  ;;  %1031 = vmatpush.msrb.mxu3 %v830_v62  ;;  %v1132_v52 = vld [vmem:[#allocation12 + $0x2e8] sm:$0xff]  ;;  %v1119_v62 = vld [vmem:[#allocation12 + $0x280] sm:$0xff] }
  0xd7   : > { %972 = vmatpush.msrb.mxu0 %v761_v53  ;;  %1012 = vmatpush.msrb.mxu2 %v762_v54  ;;  %v1051_v53 = vld [vmem:[#allocation12 + $0x60] sm:$0xff]  ;;  %v1128_v56 = vld [vmem:[#allocation12 + $0x2c8] sm:$0xff] }
  0xd8   : > { %992 = vmatpush.msrb.mxu1 %v825_v63  ;;  %1032 = vmatpush.msrb.mxu3 %v826_v0  ;;  %v1127_v54 = vld [vmem:[#allocation12 + $0x2c0] sm:$0xff]  ;;  %v1124_v60 = vld [vmem:[#allocation12 + $0x2a8] sm:$0xff] }
  0xd9   : > { %973 = vmatpush.msrb.mxu0 %v757_v55  ;;  %1013 = vmatpush.msrb.mxu2 %v758_v57  ;;  %v1052_v55 = vld [vmem:[#allocation12 + $0x68] sm:$0xff]  ;;  %v1047_v57 = vld [vmem:[#allocation12 + $0x40] sm:$0xff] }
  0xda   : > { %993 = vmatpush.msrb.mxu1 %v821_v1  ;;  %1033 = vmatpush.msrb.mxu3 %v822_v2  ;;  %v1044_v63 = vld [vmem:[#allocation12 + $0x28] sm:$0xff]  ;;  %v1039_v1 = vld [vmem:[#allocation12] sm:$0xff] }
  0xdb   : > { %974 = vmatpush.msrb.mxu0 %v753_v59  ;;  %1014 = vmatpush.msrb.mxu2 %v754_v61  ;;  %v1048_v59 = vld [vmem:[#allocation12 + $0x48] sm:$0xff]  ;;  %v1043_v61 = vld [vmem:[#allocation12 + $0x20] sm:$0xff] }
  0xdc   : > { %994 = vmatpush.msrb.mxu1 %v817_v3  ;;  %1034 = vmatpush.msrb.mxu3 %v818_v4  ;;  %v1120_v0 = vld [vmem:[#allocation12 + $0x288] sm:$0xff]  ;;  %v1115_v2 = vld [vmem:[#allocation12 + $0x260] sm:$0xff] }
  0xdd   : > { %v1040_v3 = vld [vmem:[#allocation12 + $0x8] sm:$0xff] }
  0xde   : > { %v1116_v4 = vld [vmem:[#allocation12 + $0x268] sm:$0xff] }
  0xf6   : > { %v544_v5 = vpop.f32.mrf.mxu0  ;;  %v564_v6 = vpop.f32.mrf.mxu1 }
  0xf7   : > { %v565_v7 = vadd.f32 %v564_v6, %v544_v5  ;;  %v1101_v5 = vld [vmem:[#allocation12 + $0x1f0] sm:$0xff]  ;;  %v1102_v6 = vld [vmem:[#allocation12 + $0x1f8] sm:$0xff] }
  0xf9   : > { %895 = vmatmul.f32.vlgmr.msra.gmra.mxu0 %v565_v7  ;;  %935 = vmatmul.f32.vlgmr.msra.gmra.mxu2 %v565_v7 }
  0xfa   : > { %1177 = vmatpush.msra.mxu0 %v1099_v8  ;;  %1217 = vmatpush.msra.mxu2 %v1100_v9  ;;  %v1111_v9 = vld [vmem:[#allocation12 + $0x240] sm:$0xff] }
  0xfc   : > { %1178 = vmatpush.msra.mxu0 %v1095_v10  ;;  %1218 = vmatpush.msra.mxu2 %v1096_v11  ;;  %v1112_v10 = vld [vmem:[#allocation12 + $0x248] sm:$0xff]  ;;  %v1097_v11 = vld [vmem:[#allocation12 + $0x1d0] sm:$0xff] }
  0xfd   : > { %v584_v14 = vpop.f32.mrf.mxu2  ;;  %v604_v15 = vpop.f32.mrf.mxu3 }
  0xfe   : > { %v605_v16 = vadd.f32 %v604_v15, %v584_v14  ;;  %1179 = vmatpush.msra.mxu0 %v1091_v12  ;;  %1219 = vmatpush.msra.mxu2 %v1092_v13  ;;  %v1098_v12 = vld [vmem:[#allocation12 + $0x1d8] sm:$0xff] }
 0x100   : > { %915 = vmatmul.f32.vlgmr.msra.gmra.mxu1 %v605_v16  ;;  %955 = vmatmul.f32.vlgmr.msra.gmra.mxu3 %v605_v16 }
 0x101   : > { %1180 = vmatpush.msra.mxu0 %v1087_v17  ;;  %1197 = vmatpush.msra.mxu1 %v1163_v18  ;;  %v1108_v17 = vld [vmem:[#allocation12 + $0x228] sm:$0xff]  ;;  %v1093_v18 = vld [vmem:[#allocation12 + $0x1b0] sm:$0xff] }
 0x102   : > { %1220 = vmatpush.msra.mxu2 %v1088_v19  ;;  %1237 = vmatpush.msra.mxu3 %v1164_v20  ;;  %v1094_v19 = vld [vmem:[#allocation12 + $0x1b8] sm:$0xff] }
 0x103   : > { %975 = vmatmul.f32.vlgmr.msrb.gmra.mxu0 %v565_v7  ;;  %1015 = vmatmul.f32.vlgmr.msrb.gmra.mxu2 %v565_v7 }
 0x104   : > { %1181 = vmatpush.msra.mxu0 %v1083_v21  ;;  %1198 = vmatpush.msra.mxu1 %v1159_v22  ;;  %v1103_v21 = vld [vmem:[#allocation12 + $0x200] sm:$0xff]  ;;  %v1104_v22 = vld [vmem:[#allocation12 + $0x208] sm:$0xff] }
 0x105   : > { %1221 = vmatpush.msra.mxu2 %v1084_v23  ;;  %1238 = vmatpush.msra.mxu3 %v1160_v24  ;;  %v1089_v23 = vld [vmem:[#allocation12 + $0x190] sm:$0xff] }
 0x106   : > { %1182 = vmatpush.msra.mxu0 %v1079_v25  ;;  %1199 = vmatpush.msra.mxu1 %v1155_v26  ;;  %v1165_v24 = vld [vmem:[#allocation12 + $0x3f0] sm:$0xff]  ;;  %v1090_v25 = vld [vmem:[#allocation12 + $0x198] sm:$0xff] }
 0x107   : > { %1222 = vmatpush.msra.mxu2 %v1080_v27  ;;  %1239 = vmatpush.msra.mxu3 %v1156_v28  ;;  %v1166_v26 = vld [vmem:[#allocation12 + $0x3f8] sm:$0xff]  ;;  %v1085_v27 = vld [vmem:[#allocation12 + $0x170] sm:$0xff] }
 0x108   : > { %1183 = vmatpush.msra.mxu0 %v1075_v29  ;;  %1200 = vmatpush.msra.mxu1 %v1151_v30  ;;  %v1161_v28 = vld [vmem:[#allocation12 + $0x3d0] sm:$0xff]  ;;  %v1086_v29 = vld [vmem:[#allocation12 + $0x178] sm:$0xff] }
 0x109   : > { %1223 = vmatpush.msra.mxu2 %v1076_v31  ;;  %1240 = vmatpush.msra.mxu3 %v1152_v32  ;;  %v1162_v30 = vld [vmem:[#allocation12 + $0x3d8] sm:$0xff]  ;;  %v1081_v31 = vld [vmem:[#allocation12 + $0x150] sm:$0xff] }
 0x10a   : > { %995 = vmatmul.f32.vlgmr.msrb.gmra.mxu1 %v605_v16  ;;  %1035 = vmatmul.f32.vlgmr.msrb.gmra.mxu3 %v605_v16  ;;  %v1107_v16 = vld [vmem:[#allocation12 + $0x220] sm:$0xff]  ;;  %v1157_v32 = vld [vmem:[#allocation12 + $0x3b0] sm:$0xff] }
 0x10b   : > { %1184 = vmatpush.msra.mxu0 %v1071_v33  ;;  %1201 = vmatpush.msra.mxu1 %v1147_v34  ;;  %v1082_v33 = vld [vmem:[#allocation12 + $0x158] sm:$0xff] }
 0x10c   : > { %1224 = vmatpush.msra.mxu2 %v1072_v35  ;;  %1241 = vmatpush.msra.mxu3 %v1148_v36  ;;  %v1158_v34 = vld [vmem:[#allocation12 + $0x3b8] sm:$0xff]  ;;  %v1077_v35 = vld [vmem:[#allocation12 + $0x130] sm:$0xff] }
 0x10d   : > { %1185 = vmatpush.msra.mxu0 %v1067_v37  ;;  %1202 = vmatpush.msra.mxu1 %v1143_v38  ;;  %v1153_v36 = vld [vmem:[#allocation12 + $0x390] sm:$0xff]  ;;  %v1078_v37 = vld [vmem:[#allocation12 + $0x138] sm:$0xff] }
 0x10e   : > { %1225 = vmatpush.msra.mxu2 %v1068_v39  ;;  %1242 = vmatpush.msra.mxu3 %v1144_v40  ;;  %v1154_v38 = vld [vmem:[#allocation12 + $0x398] sm:$0xff]  ;;  %v1073_v39 = vld [vmem:[#allocation12 + $0x110] sm:$0xff] }
 0x10f   : > { %1186 = vmatpush.msra.mxu0 %v1063_v41  ;;  %1203 = vmatpush.msra.mxu1 %v1139_v42  ;;  %v1149_v40 = vld [vmem:[#allocation12 + $0x370] sm:$0xff]  ;;  %v1074_v41 = vld [vmem:[#allocation12 + $0x118] sm:$0xff] }
 0x110   : > { %1226 = vmatpush.msra.mxu2 %v1064_v43  ;;  %1243 = vmatpush.msra.mxu3 %v1140_v44  ;;  %v1150_v42 = vld [vmem:[#allocation12 + $0x378] sm:$0xff]  ;;  %v1069_v43 = vld [vmem:[#allocation12 + $0xf0] sm:$0xff] }
 0x111   : > { %1187 = vmatpush.msra.mxu0 %v1059_v45  ;;  %1204 = vmatpush.msra.mxu1 %v1135_v46  ;;  %v1145_v44 = vld [vmem:[#allocation12 + $0x350] sm:$0xff]  ;;  %v1070_v45 = vld [vmem:[#allocation12 + $0xf8] sm:$0xff] }
 0x112   : > { %1227 = vmatpush.msra.mxu2 %v1060_v47  ;;  %1244 = vmatpush.msra.mxu3 %v1136_v48  ;;  %v1146_v46 = vld [vmem:[#allocation12 + $0x358] sm:$0xff]  ;;  %v1065_v47 = vld [vmem:[#allocation12 + $0xd0] sm:$0xff] }
 0x113   : > { %1188 = vmatpush.msra.mxu0 %v1055_v49  ;;  %1205 = vmatpush.msra.mxu1 %v1131_v50  ;;  %v1141_v48 = vld [vmem:[#allocation12 + $0x330] sm:$0xff]  ;;  %v1066_v49 = vld [vmem:[#allocation12 + $0xd8] sm:$0xff] }
 0x114   : > { %1228 = vmatpush.msra.mxu2 %v1056_v51  ;;  %1245 = vmatpush.msra.mxu3 %v1132_v52  ;;  %v1142_v50 = vld [vmem:[#allocation12 + $0x338] sm:$0xff]  ;;  %v1061_v51 = vld [vmem:[#allocation12 + $0xb0] sm:$0xff] }
 0x115   : > { %1189 = vmatpush.msra.mxu0 %v1051_v53  ;;  %1206 = vmatpush.msra.mxu1 %v1127_v54  ;;  %v1137_v52 = vld [vmem:[#allocation12 + $0x310] sm:$0xff]  ;;  %v1062_v53 = vld [vmem:[#allocation12 + $0xb8] sm:$0xff] }
 0x116   : > { %1229 = vmatpush.msra.mxu2 %v1052_v55  ;;  %1246 = vmatpush.msra.mxu3 %v1128_v56  ;;  %v1138_v54 = vld [vmem:[#allocation12 + $0x318] sm:$0xff]  ;;  %v1057_v55 = vld [vmem:[#allocation12 + $0x90] sm:$0xff] }
 0x117   : > { %1190 = vmatpush.msra.mxu0 %v1047_v57  ;;  %1207 = vmatpush.msra.mxu1 %v1123_v58  ;;  %v1133_v56 = vld [vmem:[#allocation12 + $0x2f0] sm:$0xff]  ;;  %v1058_v57 = vld [vmem:[#allocation12 + $0x98] sm:$0xff] }
 0x118   : > { %1230 = vmatpush.msra.mxu2 %v1048_v59  ;;  %1247 = vmatpush.msra.mxu3 %v1124_v60  ;;  %v1134_v58 = vld [vmem:[#allocation12 + $0x2f8] sm:$0xff]  ;;  %v1053_v59 = vld [vmem:[#allocation12 + $0x70] sm:$0xff] }
 0x119   : > { %1191 = vmatpush.msra.mxu0 %v1043_v61  ;;  %1208 = vmatpush.msra.mxu1 %v1119_v62  ;;  %v688_v7 = vpop.f32.mrf.mxu0  ;;  %v708_v8 = vpop.f32.mrf.mxu1  ;;  %v1129_v60 = vld [vmem:[#allocation12 + $0x2d0] sm:$0xff]  ;;  %v1054_v61 = vld [vmem:[#allocation12 + $0x78] sm:$0xff] }
 0x11a   : > { %1231 = vmatpush.msra.mxu2 %v1044_v63  ;;  %1248 = vmatpush.msra.mxu3 %v1120_v0  ;;  %v2418_v13 = vadd.f32 %v708_v8, %v688_v7  ;;  %v1130_v62 = vld [vmem:[#allocation12 + $0x2d8] sm:$0xff]  ;;  %v1049_v63 = vld [vmem:[#allocation12 + $0x50] sm:$0xff] }
 0x11b   : > { %1192 = vmatpush.msra.mxu0 %v1039_v1  ;;  %1209 = vmatpush.msra.mxu1 %v1115_v2  ;;  %v1125_v0 = vld [vmem:[#allocation12 + $0x2b0] sm:$0xff]  ;;  %v1050_v1 = vld [vmem:[#allocation12 + $0x58] sm:$0xff] }
 0x11c   : > { %1232 = vmatpush.msra.mxu2 %v1040_v3  ;;  %1249 = vmatpush.msra.mxu3 %v1116_v4  ;;  %v1126_v2 = vld [vmem:[#allocation12 + $0x2b8] sm:$0xff]  ;;  %v1045_v3 = vld [vmem:[#allocation12 + $0x30] sm:$0xff] }
 0x11d   : > { %1257 = vmatpush.msrb.mxu0 %v1101_v5  ;;  %v728_v14 = vpop.f32.mrf.mxu2  ;;  %v748_v15 = vpop.f32.mrf.mxu3  ;;  %1210 = vmatpush.msra.mxu1 %v1111_v9  ;;  %v1121_v4 = vld [vmem:[#allocation12 + $0x290] sm:$0xff]  ;;  %v1046_v5 = vld [vmem:[#allocation12 + $0x38] sm:$0xff] }
 0x11e   : > { %1297 = vmatpush.msrb.mxu2 %v1102_v6  ;;  %1250 = vmatpush.msra.mxu3 %v1112_v10  ;;  %v2420_v20 = vadd.f32 %v748_v15, %v728_v14  ;;  %v1122_v6 = vld [vmem:[#allocation12 + $0x298] sm:$0xff]  ;;  %v1041_v7 = vld [vmem:[#allocation12 + $0x10] sm:$0xff] }
 0x11f   : > { %1258 = vmatpush.msrb.mxu0 %v1097_v11  ;;  %1211 = vmatpush.msra.mxu1 %v1107_v16  ;;  %v1117_v8 = vld [vmem:[#allocation12 + $0x270] sm:$0xff]  ;;  %v1042_v9 = vld [vmem:[#allocation12 + $0x18] sm:$0xff] }
 0x120   : > { %1298 = vmatpush.msrb.mxu2 %v1098_v12  ;;  %1251 = vmatpush.msra.mxu3 %v1108_v17  ;;  %v1118_v10 = vld [vmem:[#allocation12 + $0x278] sm:$0xff]  ;;  %v1113_v11 = vld [vmem:[#allocation12 + $0x250] sm:$0xff] }
 0x121   : > { %1193 = vmatmul.f32.vlgmr.msra.gmra.mxu0 %v2418_v13  ;;  %1233 = vmatmul.f32.vlgmr.msra.gmra.mxu2 %v2418_v13  ;;  %v1114_v12 = vld [vmem:[#allocation12 + $0x258] sm:$0xff]  ;;  %v1109_v14 = vld [vmem:[#allocation12 + $0x230] sm:$0xff] }
 0x122   : > { %1259 = vmatpush.msrb.mxu0 %v1093_v18  ;;  %1299 = vmatpush.msrb.mxu2 %v1094_v19  ;;  %v1110_v15 = vld [vmem:[#allocation12 + $0x238] sm:$0xff]  ;;  %v1105_v16 = vld [vmem:[#allocation12 + $0x210] sm:$0xff] }
 0x123   : > { %1212 = vmatpush.msra.mxu1 %v1103_v21  ;;  %1252 = vmatpush.msra.mxu3 %v1104_v22  ;;  %v1106_v17 = vld [vmem:[#allocation12 + $0x218] sm:$0xff] }
 0x124   : > { %1213 = vmatmul.f32.vlgmr.msra.gmra.mxu1 %v2420_v20  ;;  %1253 = vmatmul.f32.vlgmr.msra.gmra.mxu3 %v2420_v20 }
 0x125   : > { %1260 = vmatpush.msrb.mxu0 %v1089_v23  ;;  %1277 = vmatpush.msrb.mxu1 %v1165_v24 }
 0x126   : > { %1300 = vmatpush.msrb.mxu2 %v1090_v25  ;;  %1317 = vmatpush.msrb.mxu3 %v1166_v26 }
 0x127   : > { %1261 = vmatpush.msrb.mxu0 %v1085_v27  ;;  %1278 = vmatpush.msrb.mxu1 %v1161_v28 }
 0x128   : > { %1301 = vmatpush.msrb.mxu2 %v1086_v29  ;;  %1318 = vmatpush.msrb.mxu3 %v1162_v30  ;;  %v2435_v30 = vld [vmem:[%s2700_s6] sm:$0xf] }
 0x129   : > { %1262 = vmatpush.msrb.mxu0 %v1081_v31  ;;  %1279 = vmatpush.msrb.mxu1 %v1157_v32  ;;  %v1169_v32 = vperm.slane %v2435_v30, 0 }
 0x12a   : > { %1302 = vmatpush.msrb.mxu2 %v1082_v33  ;;  %1319 = vmatpush.msrb.mxu3 %v1158_v34 }
 0x12b   : > { %1263 = vmatpush.msrb.mxu0 %v1077_v35  ;;  %1280 = vmatpush.msrb.mxu1 %v1153_v36  ;;  %v2446_v35 = vld [vmem:[%s2701_s7] sm:$0xf] }
 0x12c   : > { %1303 = vmatpush.msrb.mxu2 %v1078_v37  ;;  %1320 = vmatpush.msrb.mxu3 %v1154_v38 }
 0x12d   : > { %1264 = vmatpush.msrb.mxu0 %v1073_v39  ;;  %1281 = vmatpush.msrb.mxu1 %v1149_v40  ;;  %v1170_v39 = vperm.slane %v2435_v30, 1 }
 0x12e   : > { %1304 = vmatpush.msrb.mxu2 %v1074_v41  ;;  %1321 = vmatpush.msrb.mxu3 %v1150_v42 }
 0x12f   : > { %1265 = vmatpush.msrb.mxu0 %v1069_v43  ;;  %1282 = vmatpush.msrb.mxu1 %v1145_v44  ;;  %v1171_v43 = vperm.slane %v2435_v30, 2  ;;  %v2462_v44 = vperm.slane %v2446_v35, 0 }
 0x130   : > { %1305 = vmatpush.msrb.mxu2 %v1070_v45  ;;  %1322 = vmatpush.msrb.mxu3 %v1146_v46 }
 0x131   : > { %1266 = vmatpush.msrb.mxu0 %v1065_v47  ;;  %1283 = vmatpush.msrb.mxu1 %v1141_v48 }
 0x132   : > { %1306 = vmatpush.msrb.mxu2 %v1066_v49  ;;  %1323 = vmatpush.msrb.mxu3 %v1142_v50 }
 0x133   : > { %1267 = vmatpush.msrb.mxu0 %v1061_v51  ;;  %1284 = vmatpush.msrb.mxu1 %v1137_v52 }
 0x134   : > { %1307 = vmatpush.msrb.mxu2 %v1062_v53  ;;  %1324 = vmatpush.msrb.mxu3 %v1138_v54 }
 0x135   : > { %1268 = vmatpush.msrb.mxu0 %v1057_v55  ;;  %1285 = vmatpush.msrb.mxu1 %v1133_v56 }
 0x136   : > { %1308 = vmatpush.msrb.mxu2 %v1058_v57  ;;  %1325 = vmatpush.msrb.mxu3 %v1134_v58  ;;  %v2482_v57 = vperm.slane %v2446_v35, 1 }
 0x137   : > { %1269 = vmatpush.msrb.mxu0 %v1053_v59  ;;  %1286 = vmatpush.msrb.mxu1 %v1129_v60 }
 0x138   : > { %1309 = vmatpush.msrb.mxu2 %v1054_v61  ;;  %1326 = vmatpush.msrb.mxu3 %v1130_v62 }
 0x139   : > { %1270 = vmatpush.msrb.mxu0 %v1049_v63  ;;  %1287 = vmatpush.msrb.mxu1 %v1125_v0 }
 0x13a   : > { %1310 = vmatpush.msrb.mxu2 %v1050_v1  ;;  %1327 = vmatpush.msrb.mxu3 %v1126_v2 }
 0x13b   : > { %1271 = vmatpush.msrb.mxu0 %v1045_v3  ;;  %1288 = vmatpush.msrb.mxu1 %v1121_v4 }
 0x13c   : > { %1311 = vmatpush.msrb.mxu2 %v1046_v5  ;;  %1328 = vmatpush.msrb.mxu3 %v1122_v6 }
 0x13d   : > { %1272 = vmatpush.msrb.mxu0 %v1041_v7  ;;  %1289 = vmatpush.msrb.mxu1 %v1117_v8 }
 0x13e   : > { %1312 = vmatpush.msrb.mxu2 %v1042_v9  ;;  %1329 = vmatpush.msrb.mxu3 %v1118_v10 }
 0x13f   : > { %1273 = vmatmul.f32.vlgmr.msrb.gmra.mxu0 %v2418_v13  ;;  %1313 = vmatmul.f32.vlgmr.msrb.gmra.mxu2 %v2418_v13 }
 0x140   : > { %1290 = vmatpush.msrb.mxu1 %v1113_v11  ;;  %1330 = vmatpush.msrb.mxu3 %v1114_v12 }
 0x142   : > { %1291 = vmatpush.msrb.mxu1 %v1109_v14  ;;  %1331 = vmatpush.msrb.mxu3 %v1110_v15 }
 0x144   : > { %1292 = vmatpush.msrb.mxu1 %v1105_v16  ;;  %1332 = vmatpush.msrb.mxu3 %v1106_v17 }
 0x145   : > { %1293 = vmatmul.f32.vlgmr.msrb.gmra.mxu1 %v2420_v20  ;;  %1333 = vmatmul.f32.vlgmr.msrb.gmra.mxu3 %v2420_v20 }
 0x176   : > { %v896_v22 = vpop.f32.mrf.mxu0 }
 0x17c   : > { %v936_v21 = vpop.f32.mrf.mxu2 }
 0x17d   : > { %v916_v19 = vpop.f32.mrf.mxu1 }
 0x17e   : > { %v917_v33 = vadd.f32 %v916_v19, %v896_v22 }
 0x180   : > { %v976_v26 = vpop.f32.mrf.mxu0 }
 0x183   : > { %v956_v18 = vpop.f32.mrf.mxu3 }
 0x184   : > { %v957_v27 = vadd.f32 %v956_v18, %v936_v21 }
 0x186   : > { %v1016_v24 = vpop.f32.mrf.mxu2  ;;  %v1341_v20 = vrot.slane %v957_v27, 7 }
 0x187   : > { %v996_v13 = vpop.f32.mrf.mxu1 }
 0x188   : > { %v997_v28 = vadd.f32 %v996_v13, %v976_v26  ;;  %v1363_v37 = vsel %vm1352_vm0, %v917_v33, %v1341_v20  ;;  %v1357_v41 = vsel %vm1346_vm2, %v917_v33, %v1341_v20  ;;  %v1345_v46 = vsel %vm1344_vm4, %v917_v33, %v1341_v20 }
 0x189   : > { %v1369_v48 = vsel %vm1358_vm3, %v917_v33, %v1341_v20  ;;  %v1351_v49 = vsel %vm1350_vm6, %v917_v33, %v1341_v20  ;;  %v1381_v55 = vsel %vm1370_vm5, %v917_v33, %v1341_v20  ;;  %v1375_v59 = vsel %vm1364_vm1, %v917_v33, %v1341_v20 }
 0x18a   : > { %v2437_v31 = vrot.slane %v997_v28, 6  ;;  %v1386_v60 = vsel %vm1376_vm7, %v1341_v20, %v917_v33 }
 0x18d   : > { %v1036_v23 = vpop.f32.mrf.mxu3 }
 0x18e   : > { %v1037_v25 = vadd.f32 %v1036_v23, %v1016_v24 }
 0x190   : > { %v2430_v29 = vrot.slane %v1037_v25, 5 }
 0x192   : > { %v1365_v34 = vsel %vm1364_vm1, %v2437_v31, %v2430_v29  ;;  %v1359_v36 = vsel %vm1358_vm3, %v2437_v31, %v2430_v29  ;;  %v1347_v38 = vsel %vm1346_vm2, %v2437_v31, %v2430_v29  ;;  %v1371_v42 = vsel %vm1370_vm5, %v2437_v31, %v2430_v29 }
 0x193   : > { %v1367_v40 = vsel %vm1366_vm8, %v1363_v37, %v1365_v34  ;;  %v1361_v45 = vsel %vm1360_vm9, %v1357_v41, %v1359_v36  ;;  %v2467_v47 = vsel %vm1348_vm10, %v1345_v46, %v1347_v38  ;;  %v1353_v50 = vsel %vm1352_vm0, %v2437_v31, %v2430_v29 }
 0x194   : > { %v2474_v52 = vrot.slane %v1367_v40, 3  ;;  %v1382_v53 = vsel %vm1344_vm4, %v2437_v31, %v2430_v29  ;;  %v1373_v54 = vsel %vm1372_vm11, %v1369_v48, %v1371_v42  ;;  %v2484_v58 = vrot.slane %v1361_v45, 2 }
 0x195   : > { %v1391_v61 = vperm.slane %v2467_v47, 0  ;;  %v1392_v62 = vperm.slane %v2467_v47, 1  ;;  %v1355_v63 = vsel %vm1354_vm12, %v1351_v49, %v1353_v50  ;;  %v1377_v0 = vsel %vm1376_vm7, %v2430_v29, %v2437_v31 }
 0x196   : > { %v1393_v2 = vperm.slane %v2467_v47, 2  ;;  %v2495_v3 = vrot.slane %v1373_v54, 4  ;;  %v1384_v4 = vsel %vm1383_vm13, %v1382_v53, %v1381_v55  ;;  %v1403_v7 = vperm.slane %v2474_v52, 0 }
 0x197   : > { %v1404_v8 = vperm.slane %v2474_v52, 1  ;;  %v1394_v9 = vperm.slane %v2467_v47, 3  ;;  %v1405_v11 = vperm.slane %v2474_v52, 2  ;;  %v1406_v12 = vperm.slane %v2474_v52, 3 }
 0x198   : > { %v2503_v14 = vrot.slane %v1355_v63, 1  ;;  %v1379_v15 = vsel %vm1378_vm14, %v1375_v59, %v1377_v0  ;;  %v1399_v16 = vperm.slane %v2484_v58, 0  ;;  %v1400_v17 = vperm.slane %v2484_v58, 1 }
 0x199   : > { %v2508_v18 = vrot.slane %v1384_v4, 6  ;;  %v1387_v19 = vsel %vm1350_vm6, %v2437_v31, %v2430_v29  ;;  %v1401_v22 = vperm.slane %v2484_v58, 2  ;;  %v1402_v23 = vperm.slane %v2484_v58, 3 }
 0x19a   : > { %v1407_v13 = vperm.slane %v2495_v3, 0  ;;  %v1408_v25 = vperm.slane %v2495_v3, 1  ;;  %v1409_v26 = vperm.slane %v2495_v3, 2  ;;  %v2522_v27 = vrot.slane %v1379_v15, 5 }
 0x19b   : > { %v1410_v28 = vperm.slane %v2495_v3, 3  ;;  %v1395_v29 = vperm.slane %v2503_v14, 0  ;;  %v1396_v20 = vperm.slane %v2503_v14, 1  ;;  %v1389_v31 = vsel %vm1388_vm15, %v1387_v19, %v1386_v60 }
 0x19c   : > { %v1397_v33 = vperm.slane %v2503_v14, 2  ;;  %v1398_v34 = vperm.slane %v2503_v14, 3  ;;  %v1415_v36 = vperm.slane %v2508_v18, 0  ;;  %v1416_v37 = vperm.slane %v2508_v18, 1 }
 0x19d   : > { %v1417_v40 = vperm.slane %v2508_v18, 2  ;;  %v1418_v41 = vperm.slane %v2508_v18, 3  ;;  %v1411_v46 = vperm.slane %v2522_v27, 0  ;;  %v2539_v48 = vrot.slane %v1389_v31, 7 }
 0x19e   : > { %v1194_v51 = vpop.f32.mrf.mxu0  ;;  %v1413_v53 = vperm.slane %v2522_v27, 2  ;;  %v1172_v55 = vperm.slane %v2435_v30, 3  ;;  %v2564_v15 = vperm.slane %v2446_v35, 2  ;;  %vm1640_vm4 = vcmask 1047559  }
 0x19f   : > { %v1195_v1 = vadd.f32 %v1194_v51, %v1169_v32  ;;  %v1412_v51 = vperm.slane %v2522_v27, 1 }
 0x1a1   : > { %v1214_v5 = vpop.f32.mrf.mxu1 }
 0x1a2   : > { %v2513_v21 = vadd.f32 %v1214_v5, %v1195_v1 }
 0x1a4   : > { %v1234_v56 = vpop.f32.mrf.mxu2  ;;  %v1467_v38 = vadd.f32 %v1403_v7, %v2513_v21  ;;  %v1455_v45 = vadd.f32 %v1391_v61, %v2513_v21  ;;  %v2549_v59 = vadd.f32 %v1407_v13, %v2513_v21  ;;  %v2552_v60 = vadd.f32 %v1395_v29, %v2513_v21 }
 0x1a5   : > { %v1235_v6 = vadd.f32 %v1234_v56, %v1170_v39  ;;  %v1463_v39 = vadd.f32 %v1399_v16, %v2513_v21  ;;  %v2557_v0 = vadd.f32 %v1415_v36, %v2513_v21 }
 0x1a6   : > { %v1487_v5 = vmax.f32 %v1455_v45, 0.0  ;;  %v2577_v45 = vperm.slane %v2446_v35, 3 }
 0x1a7   : > { %v1254_v10 = vpop.f32.mrf.mxu3  ;;  %v1495_v63 = vmax.f32 %v1463_v39, 0.0 }
 0x1a8   : > { %v2518_v24 = vadd.f32 %v1254_v10, %v1235_v6  ;;  %v2191_v10 = vmov 0  }
 0x1a9   : > { %1916 = vset.pattern.permute.xlu1 %v2191_v10  ;;  %1917 = vset.pattern.permute.xlu0 %v2191_v10 }
 0x1aa   : > { %v1468_v42 = vadd.f32 %v1404_v8, %v2518_v24  ;;  %v1464_v50 = vadd.f32 %v1400_v17, %v2518_v24  ;;  %v1456_v56 = vadd.f32 %v1392_v62, %v2518_v24  ;;  %v1472_v30 = vadd.f32 %v1408_v25, %v2518_v24 }
 0x1ab   : > { %v1503_v17 = vmax.f32 %v2549_v59, 0.0  ;;  %v1460_v19 = vadd.f32 %v1396_v20, %v2518_v24  ;;  %v1529_v20 = vmul.f32 %v2462_v44, %v1487_v5  ;;  %v1480_v3 = vadd.f32 %v1416_v37, %v2518_v24 }
 0x1ac   : > { %v1500_v4 = vmax.f32 %v1468_v42, 0.0  ;;  %v1496_v7 = vmax.f32 %v1464_v50, 0.0  ;;  %v1488_v16 = vmax.f32 %v1456_v56, 0.0  ;;  %v1504_v42 = vmax.f32 %v1472_v30, 0.0 }
 0x1ae   : > { %v1538_v39 = vmul.f32 %v2482_v57, %v1496_v7  ;;  %v1546_v14 = vmul.f32 %v2482_v57, %v1504_v42 }
 0x1bc   : > { %v1274_v32 = vpop.f32.mrf.mxu0 }
 0x1bd   : > { %v1275_v49 = vadd.f32 %v1274_v32, %v1171_v43  ;;  %v1499_v43 = vmax.f32 %v1467_v38, 0.0  ;;  %v1537_v32 = vmul.f32 %v2462_v44, %v1495_v63 }
 0x1bf   : > { %v1541_v31 = vmul.f32 %v2462_v44, %v1499_v43 }
 0x1c2   : > { %v1294_v54 = vpop.f32.mrf.mxu1  ;;  %v1314_v1 = vpop.f32.mrf.mxu2 }
 0x1c3   : > { %v2554_v61 = vadd.f32 %v1294_v54, %v1275_v49  ;;  %v1315_v13 = vadd.f32 %v1314_v1, %v1172_v55  ;;  %v1530_v49 = vmul.f32 %v2482_v57, %v1488_v16  ;;  %v1492_v54 = vmax.f32 %v1460_v19, 0.0 }
 0x1c4   : > { %v1571_v1 = vadd.f32 %v1538_v39, %v1537_v32 }
 0x1c5   : > { %v1469_v62 = vadd.f32 %v1405_v11, %v2554_v61  ;;  %v1465_v6 = vadd.f32 %v1401_v22, %v2554_v61  ;;  %v1457_v8 = vadd.f32 %v1393_v2, %v2554_v61  ;;  %v1491_v11 = vmax.f32 %v2552_v60, 0.0 }
 0x1c6   : > { %v1542_v2 = vmul.f32 %v2482_v57, %v1500_v4  ;;  %v1473_v50 = vadd.f32 %v1409_v26, %v2554_v61  ;;  %v1461_v52 = vadd.f32 %v1397_v33, %v2554_v61  ;;  %v1561_v4 = vadd.f32 %v1530_v49, %v1529_v20 }
 0x1c7   : > { %v1501_v25 = vmax.f32 %v1469_v62, 0.0  ;;  %v1497_v29 = vmax.f32 %v1465_v6, 0.0  ;;  %v1489_v36 = vmax.f32 %v1457_v8, 0.0  ;;  %v1481_v37 = vadd.f32 %v1417_v40, %v2554_v61 }
 0x1c8   : > { %v1334_v22 = vpop.f32.mrf.mxu3  ;;  %v1576_v43 = vadd.f32 %v1542_v2, %v1541_v31  ;;  %v1505_v5 = vmax.f32 %v1473_v50, 0.0  ;;  %v1493_v8 = vmax.f32 %v1461_v52, 0.0  ;;  %v1414_v31 = vperm.slane %v2522_v27, 3 }
 0x1c9   : > { %v2572_v38 = vadd.f32 %v1334_v22, %v1315_v13  ;;  %v1543_v56 = vmul.f32 %v2564_v15, %v1501_v25  ;;  %v1539_v60 = vmul.f32 %v2564_v15, %v1497_v29  ;;  %v1531_v26 = vmul.f32 %v2564_v15, %v1489_v36 }
 0x1ca   : > { %v1534_v13 = vmul.f32 %v2482_v57, %v1492_v54  ;;  %v1476_v25 = vadd.f32 %v1412_v51, %v2518_v24  ;;  %v1545_v29 = vmul.f32 %v2462_v44, %v1503_v17  ;;  %v1547_v22 = vmul.f32 %v2564_v15, %v1505_v5 }
 0x1cb   : > { %v1470_v55 = vadd.f32 %v1406_v12, %v2572_v38  ;;  %v1466_v59 = vadd.f32 %v1402_v23, %v2572_v38  ;;  %v1458_v35 = vadd.f32 %v1394_v9, %v2572_v38  ;;  %v1474_v58 = vadd.f32 %v1410_v28, %v2572_v38 }
 0x1cc   : > { %v1462_v47 = vadd.f32 %v1398_v34, %v2572_v38  ;;  %v1577_v30 = vadd.f32 %v1576_v43, %v1543_v56  ;;  %v1572_v33 = vadd.f32 %v1571_v1, %v1539_v60  ;;  %v1562_v7 = vadd.f32 %v1561_v4, %v1531_v26 }
 0x1cd   : > { %v1502_v12 = vmax.f32 %v1470_v55, 0.0  ;;  %v1498_v63 = vmax.f32 %v1466_v59, 0.0  ;;  %v1490_v23 = vmax.f32 %v1458_v35, 0.0  ;;  %v1506_v16 = vmax.f32 %v1474_v58, 0.0 }
 0x1ce   : > { %v1494_v19 = vmax.f32 %v1462_v47, 0.0  ;;  %v1533_v2 = vmul.f32 %v2462_v44, %v1491_v11  ;;  %v1535_v32 = vmul.f32 %v2564_v15, %v1493_v8  ;;  %v1475_v51 = vadd.f32 %v1411_v46, %v2513_v21 }
 0x1cf   : > { %v1544_v9 = vmul.f32 %v2577_v45, %v1502_v12  ;;  %v1540_v62 = vmul.f32 %v2577_v45, %v1498_v63  ;;  %v1532_v6 = vmul.f32 %v2577_v45, %v1490_v23  ;;  %v1477_v17 = vadd.f32 %v1413_v53, %v2554_v61 }
 0x1d0   : > { %v1548_v36 = vmul.f32 %v2577_v45, %v1506_v16  ;;  %v1581_v39 = vadd.f32 %v1546_v14, %v1545_v29  ;;  %v1482_v40 = vadd.f32 %v1418_v41, %v2572_v38  ;;  %v1512_v20 = vmax.f32 %v1480_v3, 0.0 }
 0x1d1   : > { %v1578_v28 = vadd.f32 %v1577_v30, %v1544_v9  ;;  %v1573_v10 = vadd.f32 %v1572_v33, %v1540_v62  ;;  %v1563_v34 = vadd.f32 %v1562_v7, %v1532_v6  ;;  %v1536_v11 = vmul.f32 %v2577_v45, %v1494_v19 }
 0x1d2   : > { %v1566_v42 = vadd.f32 %v1534_v13, %v1533_v2  ;;  %v1478_v49 = vadd.f32 %v1414_v31, %v2572_v38  ;;  %v1508_v50 = vmax.f32 %v1476_v25, 0.0  ;;  %v1582_v54 = vadd.f32 %v1581_v39, %v1547_v22  ;;  %v1918_v13 = vld [vmem:[#allocation2] ss:$0 sm:$0xff] }
 0x1d3   : > { %1579 = vadd.xlane.f32.xlu2 %v1578_v28  ;;  %1574 = vadd.xlane.f32.xlu1 %v1573_v10  ;;  %v1511_v46 = vmax.f32 %v2557_v0, 0.0  ;;  %v1513_v55 = vmax.f32 %v1481_v37, 0.0  ;;  %v1419_v27 = vperm.slane %v2539_v48, 0  ;;  %v1507_v56 = vmax.f32 %v1475_v51, 0.0 }
 0x1d4   : > { %1564 = vadd.xlane.f32.xlu0 %v1563_v34  ;;  %v1567_v53 = vadd.f32 %v1566_v42, %v1535_v32  ;;  %v1509_v59 = vmax.f32 %v1477_v17, 0.0  ;;  %v1420_v60 = vperm.slane %v2539_v48, 1  ;;  %v1583_v18 = vadd.f32 %v1582_v54, %v1548_v36 }
 0x1d5   : > { %v1514_v41 = vmax.f32 %v1482_v40, 0.0  ;;  %v1554_v43 = vmul.f32 %v2482_v57, %v1512_v20  ;;  %v1421_v35 = vperm.slane %v2539_v48, 2  ;;  %v1510_v52 = vmax.f32 %v1478_v49, 0.0 }
 0x1d6   : > { %v1568_v26 = vadd.f32 %v1567_v53, %v1536_v11  ;;  %v1550_v12 = vmul.f32 %v2482_v57, %v1508_v50  ;;  %v1484_v0 = vadd.f32 %v1420_v60, %v2518_v24  ;;  %v1553_v63 = vmul.f32 %v2462_v44, %v1511_v46 }
 0x1d7   : > { %v1555_v1 = vmul.f32 %v2564_v15, %v1513_v55  ;;  %v1422_v58 = vperm.slane %v2539_v48, 3  ;;  %v1549_v23 = vmul.f32 %v2462_v44, %v1507_v56  ;;  %v1551_v4 = vmul.f32 %v2564_v15, %v1509_v59 }
 0x1d8   : > { %v1483_v5 = vadd.f32 %v1419_v27, %v2513_v21  ;;  %v1485_v47 = vadd.f32 %v1421_v35, %v2554_v61  ;;  %v1556_v9 = vmul.f32 %v2577_v45, %v1514_v41  ;;  %v1591_v30 = vadd.f32 %v1554_v43, %v1553_v63 }
 0x1d9   : > { %v1552_v24 = vmul.f32 %v2577_v45, %v1510_v52  ;;  %v1586_v62 = vadd.f32 %v1550_v12, %v1549_v23  ;;  %v1486_v33 = vadd.f32 %v1422_v58, %v2572_v38  ;;  %v1516_v6 = vmax.f32 %v1484_v0, 0.0 }
 0x1da   : > { %v1592_v7 = vadd.f32 %v1591_v30, %v1555_v1  ;;  %v1515_v8 = vmax.f32 %v1483_v5, 0.0  ;;  %v1517_v3 = vmax.f32 %v1485_v47, 0.0  ;;  %v1624_v32 = vlaneseq }
 0x1db   : > { %1584 = vadd.xlane.f32.xlu2 %v1583_v18  ;;  %v1587_v48 = vadd.f32 %v1586_v62, %v1551_v4  ;;  %v1518_v16 = vmax.f32 %v1486_v33, 0.0  ;;  %v1558_v21 = vmul.f32 %v2482_v57, %v1516_v6 }
 0x1dc   : > { %1569 = vadd.xlane.f32.xlu0 %v1568_v26  ;;  %v1593_v28 = vadd.f32 %v1592_v7, %v1556_v9  ;;  %v1557_v61 = vmul.f32 %v2462_v44, %v1515_v8  ;;  %v1559_v14 = vmul.f32 %v2564_v15, %v1517_v3  ;;  %v1625_v44 = vand.u32 127, %v1624_v32 }
 0x1dd   : > { %v1588_v10 = vadd.f32 %v1587_v48, %v1552_v24  ;;  %v1560_v34 = vmul.f32 %v2577_v45, %v1518_v16 }
 0x1de   : > { %v1596_v19 = vadd.f32 %v1558_v21, %v1557_v61 }
 0x1e0   : > { %v1597_v38 = vadd.f32 %v1596_v19, %v1559_v14 }
 0x1e2   : > { %v1598_v25 = vadd.f32 %v1597_v38, %v1560_v34 }
 0x1e3   : > { %1594 = vadd.xlane.f32.xlu2 %v1593_v28 }
 0x1e4   : > { %1589 = vadd.xlane.f32.xlu0 %v1588_v10 }
 0x1ec   : > { %1599 = vadd.xlane.f32.xlu0 %v1598_v25  ;;  %1605 = vperm.xlu1 %1916, %v1918_v13  }
 0x246   : > { %v1580_v22 = vpop.xlane.xlu2 %1579  ;;  %v1575_v57 = vpop.xlane.xlu1 %1574 }
 0x247   : > { %v1565_v29 = vpop.xlane.xlu0 %1564 }
 0x24e   : > { %v1585_v31 = vpop.xlane.xlu2 %1584 }
 0x24f   : > { %v1570_v37 = vpop.xlane.xlu0 %1569 }
 0x256   : > { %v1595_v20 = vpop.xlane.xlu2 %1594 }
 0x257   : > { %v1590_v2 = vpop.xlane.xlu0 %1589 }
 0x25e   : > { %v1606_v51 = vpop.permute.xlu1 %1605 }
 0x25f   : > { %v1608_v15 = vadd.f32 %v1606_v51, %v1565_v29  ;;  %v1609_v17 = vadd.f32 %v1606_v51, %v1570_v37  ;;  %v1610_v45 = vadd.f32 %v1606_v51, %v1575_v57  ;;  %v1611_v36 = vadd.f32 %v1606_v51, %v1580_v22  ;;  %v1600_v40 = vpop.xlane.xlu0 %1599 }
 0x260   : > { %v1612_v39 = vadd.f32 %v1606_v51, %v1585_v31  ;;  %v1613_v11 = vadd.f32 %v1606_v51, %v1590_v2  ;;  %v1614_v54 = vadd.f32 %v1606_v51, %v1595_v20  ;;  %v1615_v27 = vadd.f32 %v1606_v51, %v1600_v40 }
 0x261   : > { %v1626_v42 = vperm.slane %v1608_v15, %v1625_v44  ;;  %v1627_v49 = vperm.slane %v1609_v17, %v1625_v44  ;;  %v1628_v50 = vperm.slane %v1610_v45, %v1625_v44  ;;  %v1629_v46 = vperm.slane %v1611_v36, %v1625_v44 }
 0x262   : > { %v1630_v53 = vperm.slane %v1612_v39, %v1625_v44  ;;  %v1631_v59 = vperm.slane %v1613_v11, %v1625_v44  ;;  %v1632_v18 = vperm.slane %v1614_v54, %v1625_v44  ;;  %v1633_v35 = vperm.slane %v1615_v27, %v1625_v44 }
 0x263   : > { %v1634_v55 = vsel %vm1350_vm6, %v1627_v49, %v1626_v42  ;;  %vm1643_vm6 = vcmask 64512  }
 0x264   : > { %v1635_v56 = vsel %vm1346_vm2, %v1628_v50, %v1634_v55 }
 0x265   : > { %v1636_v60 = vsel %vm1352_vm0, %v1629_v46, %v1635_v56 }
 0x266   : > { %v1637_v41 = vsel %vm1358_vm3, %v1630_v53, %v1636_v60 }
 0x267   : > { %v1638_v43 = vsel %vm1364_vm1, %v1631_v59, %v1637_v41 }
 0x268   : > { %v1639_v26 = vsel %vm1370_vm5, %v1632_v18, %v1638_v43 }
 0x269   : > { %v1641_v52 = vsel %vm1640_vm4, %v1633_v35, %v1639_v26 }
 0x26a   : > { %1644 = vst.msk [vmem:[%s458_s17] sm:$0xff] %vm1643_vm6, %v1641_v52 }
 0x26b   : > { %2126 = shalt.err (!%p2123_p10)
}
 0x26c   : > { %1839 = dma.vmem_to_hbm [thread:$0]  (%p2332_p4), %s1659_s20, 128, %s1661_s25, %s1646_s2  }
 0x26d PF: > { %s1672_s4 = sand.u32 1, %s2169_s11   ;;  %p2725_p11 = scmp.ge.s32.totalorder %s2181_s14, 2 }
 0x26e   : > { %s1673_s24 = scalar_lea.sflag [#allocation5], %s1672_s4 }
 0x26f   : > { %p1862_p5 = pnand %p2725_p11, %p2336_p6 }
 0x271   : > { %p1863_p13 = pneg %p1862_p5 }
 0x273   : > { %2164 = dma.done.wait (%p1863_p13), %s1673_s24, 128  }
 0x274   : > { %2166 = vsyncadd (%p1863_p13), %s1673_s24, 4294967168  ;;  %s2726_s14 = sld [smem:[#allocation22_spill]]  ;;  %s2729_s11 = smov %s2173_s12 }
 0x275   : > { %s2727_s29 = sld [smem:[#allocation21_spill]] }
 0x276   : > { %s2728_s13 = sld [smem:[#allocation23_spill]] }
 0x27a   : > { %p29_p0 = scmp.ge.s32.totalorder %s2726_s14, 4  }
 0x27b   : > { %s2730_s12 = smov %s2727_s29 }
 0x27c   :  { %31 = sbr.rel (!%p29_p0) target bundleno = 14 (0xe), region = 130 }
 0x281   :  { %1679 = vsyncpa [#allocation4], 1 }
 0x282   :  { %1681 = vsyncpa [#allocation4 + $0x1], 1 }
 0x283   :  { %1682 = vsyncpa [#allocation7], 1 }
 0x284   :  { %1684 = vsyncpa [#allocation7 + $0x1], 1 }
 0x285   :  { %1685 = vsyncpa [#allocation10], 1 }
 0x286   :  { %1686 = vsyncpa [#allocation13], 1 }
 0x287   :  { %1687 = vsyncpa [#allocation5], 1 }
 0x288   :  { %1689 = vsyncpa [#allocation5 + $0x1], 1 }

</bundles_post_ra>
